<compile_context>
chip_gen: v7x
topology: tpu7x:2x2x1
jax: 0.10.0
libtpu: 0.0.40
codegen_flags: <defaults>
</compile_context>

<pallas_src>
import jax
import jax.numpy as jnp
from jax.experimental import pallas as pl
from jax.experimental.pallas import tpu as pltpu

STATE_DIM = 5
ACTION_DIM = 5
HIDDEN = [32, 32]
BN_EPS = 1e-5


def _sa_mlp_kernel(x_ref, a_ref,
                   w1x_ref, w1a_ref, b1_ref,
                   w2_ref, b2_ref,
                   w3_ref, b3_ref,
                   o_ref):
    """One batch tile. Activations are kept transposed (features, batch) so the
    batch axis maps to lanes; weights are (out, in), biases are (out, 1)."""
    x = x_ref[...]                                   # (TILE_N, STATE_DIM)
    a = a_ref[...]                                   # (TILE_N, ACTION_DIM)

    # ---- Layer 1: Linear(10 -> 32) + ReLU. (Dropout = identity in eval; BN1 is
    # pre-folded into layer 2's weights in the wrapper.)
    # Contract the in-feature axis of the (out, in) weight with the feature axis
    # of the (batch, in) activations -> (out, batch); batch stays on lanes.
    dn_tb = (((1,), (1,)), ((), ()))
    h = jax.lax.dot_general(w1x_ref[...], x, dn_tb,
                            preferred_element_type=jnp.float32)
    h = h + jax.lax.dot_general(w1a_ref[...], a, dn_tb,
                                preferred_element_type=jnp.float32)
    h = jnp.maximum(h + b1_ref[...], 0.0)            # (H1, TILE_N)

    # ---- Layer 2: (BN1-folded) Linear(32 -> 32) + ReLU.
    dn_oi = (((1,), (0,)), ((), ()))                 # (out, in) @ (in, batch)
    h = jax.lax.dot_general(w2_ref[...], h, dn_oi,
                            preferred_element_type=jnp.float32)
    h = jnp.maximum(h + b2_ref[...], 0.0)            # (H2, TILE_N)

    # ---- Output head: (BN2-folded) Linear(32 -> 1) + Sigmoid (EUP slot).
    logits = jax.lax.dot_general(w3_ref[...], h, dn_oi,
                                 preferred_element_type=jnp.float32) + b3_ref[...]
    o_ref[...] = jax.nn.sigmoid(logits)              # (1, TILE_N), lane-dense store


def _pick_tile(n):
    # Lane-aligned batch tile; big enough to amortize the ~0.35us/grid-step
    # overhead, small enough (~3 MiB with double-buffering) to stay far below the
    # scoped VMEM limit on v5e / v6e / v7x.
    full = -(-n // 128) * 128
    return min(1024, full)


@jax.jit
def sa_classifier_forward(X, A, params):
    X = X.astype(jnp.float32)
    A = A.astype(jnp.float32)
    N, sd = X.shape
    ad = A.shape[1]
    h1 = params["w1"].shape[1]
    h2 = params["w2"].shape[1]

    # ---- Fold eval-mode BatchNorms into the following Linear layers (tiny,
    # parameter-side work; removes 12 broadcast refs + rsqrt chains per tile).
    s1 = params["g1"] * jax.lax.rsqrt(params["rv1"] + BN_EPS)        # (1, H1)
    t1 = params["bt1"] - params["rm1"] * s1
    s2 = params["g2"] * jax.lax.rsqrt(params["rv2"] + BN_EPS)        # (1, H2)
    t2 = params["bt2"] - params["rm2"] * s2

    w2f = params["w2"] * s1.T                       # diag(s1) @ W2     (H1, H2)
    b2f = params["b2"] + t1 @ params["w2"]          # (1, H2)
    w3f = params["w_out"] * s2.T                    # diag(s2) @ W3     (H2, 1)
    b3f = params["b_out"] + t2 @ params["w_out"]    # (1, 1)

    # ---- Re-layout weights to (out, in) / biases to (out, 1); split W1 so the
    # kernel consumes X and A separately (no wrapper-side concat HBM pass).
    w1x = params["w1"][:sd, :].T                    # (H1, sd)
    w1a = params["w1"][sd:, :].T                    # (H1, ad)
    b1t = params["b1"].T                            # (H1, 1)
    w2t = w2f.T                                     # (H2, H1)
    b2t = b2f.T                                     # (H2, 1)
    w3t = w3f.T                                     # (1, H2)
    b3t = b3f                                       # (1, 1)

    tile_n = _pick_tile(N)
    grid = (pl.cdiv(N, tile_n),)

    def resident(shape):
        # Whole-array parameter block, constant across the batch grid.
        return pl.BlockSpec(shape, lambda i: (0,) * len(shape))

    flops = 2 * N * ((sd + ad) * h1 + h1 * h2 + h2)
    bytes_accessed = 4 * (N * (sd + ad + 1)
                          + (sd + ad) * h1 + h1 + h1 * h2 + h2 + h2 + 1)

    out_t = pl.pallas_call(
        _sa_mlp_kernel,
        out_shape=jax.ShapeDtypeStruct((1, N), jnp.float32),
        grid=grid,
        in_specs=[
            pl.BlockSpec((tile_n, sd), lambda i: (i, 0)),   # X batch tile
            pl.BlockSpec((tile_n, ad), lambda i: (i, 0)),   # A batch tile
            resident((h1, sd)),
            resident((h1, ad)),
            resident((h1, 1)),
            resident((h2, h1)),
            resident((h2, 1)),
            resident((1, h2)),
            resident((1, 1)),
        ],
        out_specs=pl.BlockSpec((1, tile_n), lambda i: (0, i)),
        compiler_params=pltpu.CompilerParams(
            dimension_semantics=("parallel",),   # shard batch tiles across TCs (v7x)
        ),
        cost_estimate=pl.CostEstimate(
            flops=flops, transcendentals=N, bytes_accessed=bytes_accessed),
    )(X, A, w1x, w1a, b1t, w2t, b2t, w3t, b3t)

    # (1, N) -> (N, 1): pure layout change on a contiguous array, no extra compute.
    return out_t.reshape(N, 1)


def init_params(key, state_dim=STATE_DIM, action_dim=ACTION_DIM, hidden=HIDDEN):
    """Parameter init mimicking nn.Linear defaults, with non-trivial BatchNorm1d
    affine params / running stats so the BN-folding path is genuinely exercised."""
    params = {}
    prev = state_dim + action_dim
    keys = jax.random.split(key, 6 * len(hidden) + 2)
    ki = 0
    for li, nh in enumerate(hidden, start=1):
        bound = 1.0 / (prev ** 0.5)
        params[f"w{li}"] = jax.random.uniform(keys[ki], (prev, nh), jnp.float32, -bound, bound); ki += 1
        params[f"b{li}"] = jax.random.uniform(keys[ki], (1, nh), jnp.float32, -bound, bound); ki += 1
        params[f"g{li}"] = 1.0 + 0.1 * jax.random.normal(keys[ki], (1, nh), jnp.float32); ki += 1
        params[f"bt{li}"] = 0.1 * jax.random.normal(keys[ki], (1, nh), jnp.float32); ki += 1
        params[f"rm{li}"] = 0.1 * jax.random.normal(keys[ki], (1, nh), jnp.float32); ki += 1
        params[f"rv{li}"] = 1.0 + 0.1 * jax.random.uniform(keys[ki], (1, nh), jnp.float32); ki += 1
        prev = nh
    bound = 1.0 / (prev ** 0.5)
    params["w_out"] = jax.random.uniform(keys[ki], (prev, 1), jnp.float32, -bound, bound); ki += 1
    params["b_out"] = jax.random.uniform(keys[ki], (1, 1), jnp.float32, -bound, bound)
    return params


def _reference_forward(X, A, params):
    """Pure-JAX reference with the original (unfolded) eval-mode math."""
    h = jnp.concatenate([X, A], axis=1).astype(jnp.float32)
    for li in (1, 2):
        h = h @ params[f"w{li}"] + params[f"b{li}"]
        h = jnp.maximum(h, 0.0)
        h = (h - params[f"rm{li}"]) / jnp.sqrt(params[f"rv{li}"] + BN_EPS)
        h = h * params[f"g{li}"] + params[f"bt{li}"]
    logits = h @ params["w_out"] + params["b_out"]
    return jax.nn.sigmoid(logits)


if __name__ == "__main__":
    key = jax.random.PRNGKey(0)
    k_param, k_x, k_a = jax.random.split(key, 3)

    batch = 2048   # two 1024-row tiles -> exercises the pipelined, parallel batch grid
    X = jax.random.normal(k_x, (batch, STATE_DIM), jnp.float32)
    A = jax.random.normal(k_a, (batch, ACTION_DIM), jnp.float32)

    params = init_params(k_param)

    y = jax.block_until_ready(sa_classifier_forward(X, A, params))
    y_ref = _reference_forward(X, A, params)

    assert y.shape == (batch, 1)
    assert jnp.allclose(y, y_ref, atol=1e-5, rtol=1e-5), (
        "mismatch vs reference: max abs err "
        f"{float(jnp.max(jnp.abs(y - y_ref)))}")

    print("KERNEL_OK")
</pallas_src>

<mosaic_0001>
module attributes {stable_mosaic.version = 11 : i64} {
  func.func @_sa_mlp_kernel(%arg0: i32, %arg1: memref<1024x5xf32, #tpu.memory_space<vmem>>, %arg2: memref<1024x5xf32, #tpu.memory_space<vmem>>, %arg3: memref<32x5xf32, #tpu.memory_space<vmem>>, %arg4: memref<32x5xf32, #tpu.memory_space<vmem>>, %arg5: memref<32x1xf32, #tpu.memory_space<vmem>>, %arg6: memref<32x32xf32, #tpu.memory_space<vmem>>, %arg7: memref<32x1xf32, #tpu.memory_space<vmem>>, %arg8: memref<1x32xf32, #tpu.memory_space<vmem>>, %arg9: memref<1x1xf32, #tpu.memory_space<vmem>>, %arg10: memref<1x1024xf32, #tpu.memory_space<vmem>>) attributes {dimension_semantics = [#tpu.dimension_semantics<parallel>], iteration_bounds = array<i64: 2>, scalar_prefetch = 0 : i64, scratch_operands = 0 : i64, tpu.core_type = #tpu.core_type<tc>, window_params = [{transform_indices = @transform_0, window_bounds = array<i64: 1024, 5>}, {transform_indices = @transform_1, window_bounds = array<i64: 1024, 5>}, {pipeline_mode = #tpu.pipeline_mode<synchronous>, transform_indices = @transform_2, window_bounds = array<i64: 32, 5>}, {pipeline_mode = #tpu.pipeline_mode<synchronous>, transform_indices = @transform_3, window_bounds = array<i64: 32, 5>}, {pipeline_mode = #tpu.pipeline_mode<synchronous>, transform_indices = @transform_4, window_bounds = array<i64: 32, 1>}, {pipeline_mode = #tpu.pipeline_mode<synchronous>, transform_indices = @transform_5, window_bounds = array<i64: 32, 32>}, {pipeline_mode = #tpu.pipeline_mode<synchronous>, transform_indices = @transform_6, window_bounds = array<i64: 32, 1>}, {pipeline_mode = #tpu.pipeline_mode<synchronous>, transform_indices = @transform_7, window_bounds = array<i64: 1, 32>}, {pipeline_mode = #tpu.pipeline_mode<synchronous>, transform_indices = @transform_8, window_bounds = array<i64: 1, 1>}, {transform_indices = @transform_9, window_bounds = array<i64: 1, 1024>}]} {
    %c0 = arith.constant 0 : index
    %c0_0 = arith.constant 0 : index
    %0 = vector.load %arg1[%c0, %c0_0] : memref<1024x5xf32, #tpu.memory_space<vmem>>, vector<1024x5xf32>
    %c0_1 = arith.constant 0 : index
    %c0_2 = arith.constant 0 : index
    %1 = vector.load %arg2[%c0_1, %c0_2] : memref<1024x5xf32, #tpu.memory_space<vmem>>, vector<1024x5xf32>
    %c0_3 = arith.constant 0 : index
    %c0_4 = arith.constant 0 : index
    %2 = vector.load %arg3[%c0_3, %c0_4] : memref<32x5xf32, #tpu.memory_space<vmem>>, vector<32x5xf32>
    %cst = arith.constant dense<0.000000e+00> : vector<32x1024xf32>
    %3 = tpu.matmul %2, %0, %cst {dimension_numbers = #tpu.dot_dimension_numbers<[1], [1], [0], [0], [0, 0, 1, 0], [], []>} : vector<32x5xf32>, vector<1024x5xf32>, vector<32x1024xf32> -> vector<32x1024xf32>
    %c0_5 = arith.constant 0 : index
    %c0_6 = arith.constant 0 : index
    %4 = vector.load %arg4[%c0_5, %c0_6] : memref<32x5xf32, #tpu.memory_space<vmem>>, vector<32x5xf32>
    %cst_7 = arith.constant dense<0.000000e+00> : vector<32x1024xf32>
    %5 = tpu.matmul %4, %1, %cst_7 {dimension_numbers = #tpu.dot_dimension_numbers<[1], [1], [0], [0], [0, 0, 1, 0], [], []>} : vector<32x5xf32>, vector<1024x5xf32>, vector<32x1024xf32> -> vector<32x1024xf32>
    %6 = arith.addf %3, %5 : vector<32x1024xf32>
    %c0_8 = arith.constant 0 : index
    %c0_9 = arith.constant 0 : index
    %7 = vector.load %arg5[%c0_8, %c0_9] : memref<32x1xf32, #tpu.memory_space<vmem>>, vector<32x1xf32>
    %8 = vector.broadcast %7 : vector<32x1xf32> to vector<32x1024xf32>
    %9 = arith.addf %6, %8 : vector<32x1024xf32>
    %cst_10 = arith.constant 0.000000e+00 : f32
    %10 = vector.broadcast %cst_10 : f32 to vector<32x1024xf32>
    %11 = arith.maximumf %9, %10 : vector<32x1024xf32>
    %c0_11 = arith.constant 0 : index
    %c0_12 = arith.constant 0 : index
    %12 = vector.load %arg6[%c0_11, %c0_12] : memref<32x32xf32, #tpu.memory_space<vmem>>, vector<32x32xf32>
    %cst_13 = arith.constant dense<0.000000e+00> : vector<32x1024xf32>
    %13 = tpu.matmul %12, %11, %cst_13 {dimension_numbers = #tpu.dot_dimension_numbers<[1], [0], [0], [1], [0, 0, 1, 1], [], []>} : vector<32x32xf32>, vector<32x1024xf32>, vector<32x1024xf32> -> vector<32x1024xf32>
    %c0_14 = arith.constant 0 : index
    %c0_15 = arith.constant 0 : index
    %14 = vector.load %arg7[%c0_14, %c0_15] : memref<32x1xf32, #tpu.memory_space<vmem>>, vector<32x1xf32>
    %15 = vector.broadcast %14 : vector<32x1xf32> to vector<32x1024xf32>
    %16 = arith.addf %13, %15 : vector<32x1024xf32>
    %cst_16 = arith.constant 0.000000e+00 : f32
    %17 = vector.broadcast %cst_16 : f32 to vector<32x1024xf32>
    %18 = arith.maximumf %16, %17 : vector<32x1024xf32>
    %c0_17 = arith.constant 0 : index
    %c0_18 = arith.constant 0 : index
    %19 = vector.load %arg8[%c0_17, %c0_18] : memref<1x32xf32, #tpu.memory_space<vmem>>, vector<1x32xf32>
    %cst_19 = arith.constant dense<0.000000e+00> : vector<1x1024xf32>
    %20 = tpu.matmul %19, %18, %cst_19 {dimension_numbers = #tpu.dot_dimension_numbers<[1], [0], [0], [1], [0, 0, 1, 1], [], []>} : vector<1x32xf32>, vector<32x1024xf32>, vector<1x1024xf32> -> vector<1x1024xf32>
    %c0_20 = arith.constant 0 : index
    %c0_21 = arith.constant 0 : index
    %21 = vector.load %arg9[%c0_20, %c0_21] : memref<1x1xf32, #tpu.memory_space<vmem>>, vector<1x1xf32>
    %22 = vector.broadcast %21 : vector<1x1xf32> to vector<1x1024xf32>
    %23 = arith.addf %20, %22 : vector<1x1024xf32>
    %24 = arith.negf %23 : vector<1x1024xf32>
    %25 = math.exp %24 : vector<1x1024xf32>
    %cst_22 = arith.constant 1.000000e+00 : f32
    %26 = vector.broadcast %cst_22 : f32 to vector<1x1024xf32>
    %27 = arith.addf %26, %25 : vector<1x1024xf32>
    %28 = arith.divf %26, %27 : vector<1x1024xf32>
    %c0_23 = arith.constant 0 : index
    %c0_24 = arith.constant 0 : index
    %29 = vector.load %arg10[%c0_23, %c0_24] : memref<1x1024xf32, #tpu.memory_space<vmem>>, vector<1x1024xf32>
    tpu.vector_store %arg10[%c0_23, %c0_24], %28 {strides = array<i32>} : memref<1x1024xf32, #tpu.memory_space<vmem>>, vector<1x1024xf32>,
    return
  }
  func.func @transform_0(%arg0: i32) -> (i32, i32) {
    %c0_i32 = arith.constant 0 : i32
    %c0_i32_0 = arith.constant 0 : i32
    return %arg0, %c0_i32 : i32, i32
  }
  func.func @transform_1(%arg0: i32) -> (i32, i32) {
    %c0_i32 = arith.constant 0 : i32
    %c0_i32_0 = arith.constant 0 : i32
    return %arg0, %c0_i32 : i32, i32
  }
  func.func @transform_2(%arg0: i32) -> (i32, i32) {
    %c0_i32 = arith.constant 0 : i32
    %c0_i32_0 = arith.constant 0 : i32
    %c0_i32_1 = arith.constant 0 : i32
    return %c0_i32, %c0_i32_0 : i32, i32
  }
  func.func @transform_3(%arg0: i32) -> (i32, i32) {
    %c0_i32 = arith.constant 0 : i32
    %c0_i32_0 = arith.constant 0 : i32
    %c0_i32_1 = arith.constant 0 : i32
    return %c0_i32, %c0_i32_0 : i32, i32
  }
  func.func @transform_4(%arg0: i32) -> (i32, i32) {
    %c0_i32 = arith.constant 0 : i32
    %c0_i32_0 = arith.constant 0 : i32
    %c0_i32_1 = arith.constant 0 : i32
    return %c0_i32, %c0_i32_0 : i32, i32
  }
  func.func @transform_5(%arg0: i32) -> (i32, i32) {
    %c0_i32 = arith.constant 0 : i32
    %c0_i32_0 = arith.constant 0 : i32
    %c0_i32_1 = arith.constant 0 : i32
    return %c0_i32, %c0_i32_0 : i32, i32
  }
  func.func @transform_6(%arg0: i32) -> (i32, i32) {
    %c0_i32 = arith.constant 0 : i32
    %c0_i32_0 = arith.constant 0 : i32
    %c0_i32_1 = arith.constant 0 : i32
    return %c0_i32, %c0_i32_0 : i32, i32
  }
  func.func @transform_7(%arg0: i32) -> (i32, i32) {
    %c0_i32 = arith.constant 0 : i32
    %c0_i32_0 = arith.constant 0 : i32
    %c0_i32_1 = arith.constant 0 : i32
    return %c0_i32, %c0_i32_0 : i32, i32
  }
  func.func @transform_8(%arg0: i32) -> (i32, i32) {
    %c0_i32 = arith.constant 0 : i32
    %c0_i32_0 = arith.constant 0 : i32
    %c0_i32_1 = arith.constant 0 : i32
    return %c0_i32, %c0_i32_0 : i32, i32
  }
  func.func @transform_9(%arg0: i32) -> (i32, i32) {
    %c0_i32 = arith.constant 0 : i32
    %c0_i32_0 = arith.constant 0 : i32
    return %c0_i32, %arg0 : i32, i32
  }
}

</mosaic_0001>

<bundles_post_ra>
// kernel: sa_classifier_forward.1
= control target key start
LH: loop header
LB: loop body
LE: loop exit
PB: predicated region body
PF: predicated region fallthrough
CT: control target
= control target key end

     0   :  { %s5451_s0 = inlined_call_operand.vmem [shape: f32[2048,5], index: 0, kind: input, shape index: {}]   ;;  %s5452_s1 = inlined_call_operand.vmem [shape: f32[2048,5], index: 1, kind: input, shape index: {}]   ;;  %s5453_s2 = inlined_call_operand.vmem [shape: f32[32,5], index: 2, kind: input, shape index: {}]   ;;  %s5454_s3 = inlined_call_operand.vmem [shape: f32[32,5], index: 3, kind: input, shape index: {}]   ;;  %s5455_s4 = inlined_call_operand.vmem [shape: f32[32,1], index: 4, kind: input, shape index: {}]   ;;  %s5456_s5 = inlined_call_operand.vmem [shape: f32[32,32], index: 5, kind: input, shape index: {}]   ;;  %s5457_s6 = inlined_call_operand.vmem [shape: f32[32,1], index: 6, kind: input, shape index: {}]   ;;  %s5458_s7 = inlined_call_operand.vmem [shape: f32[1,32], index: 7, kind: input, shape index: {}]   ;;  %s5459_s8 = inlined_call_operand.<no memory space> [shape: f32[1,1], index: 8, kind: input, shape index: {}]   ;;  %s5460_s9 = inlined_call_operand.hbm [shape: f32[1,2048], index: 9, kind: output, shape index: {}]  }
   0x1   :  { %v14_v0 = vstv %s5459_s8 }
   0x2   :  { %15 = vst [vmem:[#allocation2] sm:$0x1] %v14_v0 }
   0x3   :  { %16 = vsyncpa [#allocation4], 0 }
   0x4   :  { %18 = vsyncpa [#allocation4 + $0x1], 0  ;;  %s4463_s11 = smov 0   ;;  %s4465_s12 = smov 0  }
   0x5   :  { %s4467_s13 = smov 0   ;;  %s4469_s14 = smov 0  }
   0x6 LB: > { %s3134_s8 = sadd.s32 4294967295, %s4404_s14   ;;  %s3135_s15 = sadd.s32 4294967294, %s4404_s14   ;;  %s4404_s14 = sphi %s4469_s14, %s5468_s14   ;;  %s4400_s13 = sphi %s4467_s13, %s5467_s13   ;;  %s4396_s12 = sphi %s4465_s12, %s5466_s12   ;;  %s4392_s11 = sphi %s4463_s11, %s5465_s11  }
   0x7   : > { %s4486_s16 = sadd.s32 1, %s4404_s14   ;;  %s230_s17 = sadd.s32 1, %s4400_s13 }
   0x8   : > { %s227_s18 = ssub.s32 %s4404_s14, %s4486_s16  ;;  %p240_p0 = scmp.ne.s32.totalorder %s4400_s13, %s4396_s12 }
   0x9   : > { %p228_p1 = scmp.eq.s32.totalorder %s227_s18, 0  ;;  %p241_p2 = scmp.eq.s32.totalorder %s3134_s8, 1 }
   0xa   : > { %p246_p3 = scmp.ne.s32.totalorder %s4396_s12, %s4392_s11  ;;  %p247_p4 = scmp.eq.s32.totalorder %s3135_s15, 1 }
   0xb   : > { %s4496_s19 = scalar_select %p228_p1, %s4400_s13, %s230_s17  }
   0xc   : > { %p4498_p5 = por %p241_p2, %p240_p0  ;;  %p4502_p6 = por %p247_p4, %p246_p3 }
   0xd   : > { %p3138_p7 = scmp.ge.s32.totalorder %s4404_s14, 1  ;;  %p304_p8 = scmp.lt.s32.totalorder %s4404_s14, 3 }
   0xf   : > { %p305_p9 = pnand %p3138_p7, %p304_p8 }
  0x10   : > { %s4508_s22 = sshll.u32 (!%p305_p9), %s3134_s8, 7  ;;  %vm622_vm0 = vcmask (!%p305_p9), 39936   ;;  %v4513_v1 = vld [vmem:[%s5454_s3] sm:$0xff] (!%p305_p9)  ;;  %v4407_v2 = vmov (!%p305_p9), 0.0   ;;  %vm2243_vm2 = vcmask (!%p305_p9), 261120   ;;  %s342_s18 = sand.u32 (!%p305_p9), 1, %s4396_s12  }
  0x11   : > { %308 = sbr.rel (%p305_p9) target bundleno = 1025 (0x401), region = 56  ;;  %p346_p10 = scmp.lt.s32.totalorder (!%p305_p9), %s4508_s22, 255  ;;  %3498 = vmatprep.mubr.msk.f32.mxu0 (!%p305_p9), %vm622_vm0, %v4513_v1  ;;  %3538 = vmatprep.mubr.msk.f32.mxu1 (!%p305_p9), %vm622_vm0, %v4513_v1  ;;  %vm4533_vm1 = vmpackc.low (!%p305_p9), %vm622_vm0, %vm622_vm0 }
  0x12   : > { %s3139_s23 = sshll.u32 (!%p305_p9), %s342_s18, 3  ;;  %s5409_s28 = scalar_lea.hbm (!%p305_p9), %s5460_s9, %s4508_s22 }
  0x13   : > { %s344_s24 = scalar_lea.vmem (!%p305_p9), [#allocation3], %s3139_s23  ;;  %s4409_s10 = smov (!%p305_p9), [#allocation3]  }
  0x14   : > { %s4346_s8 = sshll.u32 (!%p305_p9), %s4409_s10, 4  ;;  %s4347_s8 = int_to_ptr.vmem [resolvable:$false] %s4346_s8 }
  0x15   : > { %s4348_s15 = scalar_lea.vmem (!%p305_p9), %s4347_s8, 256 }
  0x18   : > { %s4521_s25 = scalar_select %p346_p10, %s4508_s22, 255 }
  0x1a   : > { %s3141_s26 = sshll.u32 %s4521_s25, 3 }
  0x1b   : > { %s4529_s29 = scalar_lea.vmem %s5452_s1, %s3141_s26  ;;  %s4829_s27 = scalar_lea.vmem %s5451_s0, %s3141_s26 }
  0x1c   : > { %v502_v3 = vld [vmem:[%s4529_s29 + $0x80] sm:$0xff]  ;;  %v503_v4 = vld [vmem:[%s4529_s29 + $0x88] sm:$0xff]  ;;  %v504_v14 = vld [vmem:[%s4529_s29 + $0x90] sm:$0xff] }
  0x1d   : > { %v534_v5 = vld [vmem:[%s4529_s29 + $0x180] sm:$0xff]  ;;  %v3786_v6 = vpack.c.bf16 %v503_v4, %v502_v3  ;;  %v535_v7 = vld [vmem:[%s4529_s29 + $0x188] sm:$0xff]  ;;  %v505_v16 = vld [vmem:[%s4529_s29 + $0x98] sm:$0xff] }
  0x1e   : > { %v486_v8 = vld [vmem:[%s4529_s29] sm:$0xff]  ;;  %v487_v9 = vld [vmem:[%s4529_s29 + $0x8] sm:$0xff]  ;;  %v3834_v10 = vpack.c.bf16 %v535_v7, %v534_v5  ;;  %v536_v17 = vld [vmem:[%s4529_s29 + $0x190] sm:$0xff]  ;;  %v3792_v19 = vpack.c.bf16 %v505_v16, %v504_v14 }
  0x1f   : > { %v3789_v11 = vpack.c.bf16 %v487_v9, %v486_v8  ;;  %v518_v12 = vld [vmem:[%s4529_s29 + $0x100] sm:$0xff]  ;;  %v519_v13 = vld [vmem:[%s4529_s29 + $0x108] sm:$0xff]  ;;  %3788 = vmatprep.subr.msk.bf16.mxu0 %vm4533_vm1, %v3786_v6  ;;  %v537_v18 = vld [vmem:[%s4529_s29 + $0x198] sm:$0xff] }
  0x20   : > { %v3837_v15 = vpack.c.bf16 %v519_v13, %v518_v12  ;;  %3836 = vmatprep.subr.msk.bf16.mxu1 %vm4533_vm1, %v3834_v10  ;;  %v3840_v20 = vpack.c.bf16 %v537_v18, %v536_v17  ;;  %v488_v21 = vld [vmem:[%s4529_s29 + $0x10] sm:$0xff]  ;;  %v489_v22 = vld [vmem:[%s4529_s29 + $0x18] sm:$0xff]  ;;  %v506_v25 = vld [vmem:[%s4529_s29 + $0xa0] sm:$0xff] }
  0x21   : > { %3791 = vmatpush3.bf16.xpose.msk.msra.mxu0 %vm4533_vm1, %v3789_v11  ;;  %v520_v23 = vld [vmem:[%s4529_s29 + $0x110] sm:$0xff]  ;;  %v521_v24 = vld [vmem:[%s4529_s29 + $0x118] sm:$0xff]  ;;  %v507_v26 = vld [vmem:[%s4529_s29 + $0xa8] sm:$0xff]  ;;  %v3795_v29 = vpack.c.bf16 %v489_v22, %v488_v21 }
  0x22   : > { %3839 = vmatpush3.bf16.xpose.msk.msra.mxu1 %vm4533_vm1, %v3837_v15  ;;  %3794 = vmatprep.subr.msk.bf16.mxu0 %vm4533_vm1, %v3792_v19  ;;  %v538_v27 = vld [vmem:[%s4529_s29 + $0x1a0] sm:$0xff]  ;;  %v539_v28 = vld [vmem:[%s4529_s29 + $0x1a8] sm:$0xff]  ;;  %v3843_v30 = vpack.c.bf16 %v521_v24, %v520_v23  ;;  %v3798_v31 = vpack.c.bf16 %v507_v26, %v506_v25  ;;  %v508_v37 = vld [vmem:[%s4529_s29 + $0xb0] sm:$0xff] }
  0x23   : > { %3842 = vmatprep.subr.msk.bf16.mxu1 %vm4533_vm1, %v3840_v20  ;;  %v3846_v32 = vpack.c.bf16 %v539_v28, %v538_v27  ;;  %v490_v33 = vld [vmem:[%s4529_s29 + $0x20] sm:$0xff]  ;;  %v491_v34 = vld [vmem:[%s4529_s29 + $0x28] sm:$0xff]  ;;  %v509_v38 = vld [vmem:[%s4529_s29 + $0xb8] sm:$0xff] }
  0x24   : > { %v522_v35 = vld [vmem:[%s4529_s29 + $0x120] sm:$0xff]  ;;  %v523_v36 = vld [vmem:[%s4529_s29 + $0x128] sm:$0xff]  ;;  %v540_v39 = vld [vmem:[%s4529_s29 + $0x1b0] sm:$0xff]  ;;  %v3801_v41 = vpack.c.bf16 %v491_v34, %v490_v33  ;;  %v3804_v43 = vpack.c.bf16 %v509_v38, %v508_v37 }
  0x25   : > { %v541_v40 = vld [vmem:[%s4529_s29 + $0x1b8] sm:$0xff]  ;;  %v3849_v42 = vpack.c.bf16 %v523_v36, %v522_v35  ;;  %v492_v45 = vld [vmem:[%s4529_s29 + $0x30] sm:$0xff]  ;;  %v510_v49 = vld [vmem:[%s4529_s29 + $0xc0] sm:$0xff] }
  0x26   : > { %v3852_v44 = vpack.c.bf16 %v541_v40, %v540_v39  ;;  %v493_v46 = vld [vmem:[%s4529_s29 + $0x38] sm:$0xff]  ;;  %v524_v47 = vld [vmem:[%s4529_s29 + $0x130] sm:$0xff]  ;;  %v511_v50 = vld [vmem:[%s4529_s29 + $0xc8] sm:$0xff] }
  0x27   : > { %v525_v48 = vld [vmem:[%s4529_s29 + $0x138] sm:$0xff]  ;;  %v542_v51 = vld [vmem:[%s4529_s29 + $0x1c0] sm:$0xff]  ;;  %v543_v52 = vld [vmem:[%s4529_s29 + $0x1c8] sm:$0xff]  ;;  %v3807_v53 = vpack.c.bf16 %v493_v46, %v492_v45  ;;  %v3810_v55 = vpack.c.bf16 %v511_v50, %v510_v49 }
  0x28   : > { %v3855_v54 = vpack.c.bf16 %v525_v48, %v524_v47  ;;  %v3858_v56 = vpack.c.bf16 %v543_v52, %v542_v51  ;;  %v494_v57 = vld [vmem:[%s4529_s29 + $0x40] sm:$0xff]  ;;  %v495_v58 = vld [vmem:[%s4529_s29 + $0x48] sm:$0xff]  ;;  %v512_v61 = vld [vmem:[%s4529_s29 + $0xd0] sm:$0xff] }
  0x29   : > { %3797 = vmatpush3.bf16.xpose.msk.msra.mxu0 %vm4533_vm1, %v3795_v29  ;;  %v526_v59 = vld [vmem:[%s4529_s29 + $0x140] sm:$0xff]  ;;  %v527_v60 = vld [vmem:[%s4529_s29 + $0x148] sm:$0xff]  ;;  %v513_v62 = vld [vmem:[%s4529_s29 + $0xd8] sm:$0xff]  ;;  %v3813_v3 = vpack.c.bf16 %v495_v58, %v494_v57 }
  0x2a   : > { %3845 = vmatpush3.bf16.xpose.msk.msra.mxu1 %vm4533_vm1, %v3843_v30  ;;  %3800 = vmatprep.subr.msk.bf16.mxu0 %vm4533_vm1, %v3798_v31  ;;  %v544_v63 = vld [vmem:[%s4529_s29 + $0x1d0] sm:$0xff]  ;;  %v545_v0 = vld [vmem:[%s4529_s29 + $0x1d8] sm:$0xff]  ;;  %v3861_v4 = vpack.c.bf16 %v527_v60, %v526_v59  ;;  %v3816_v5 = vpack.c.bf16 %v513_v62, %v512_v61  ;;  %v514_v11 = vld [vmem:[%s4529_s29 + $0xe0] sm:$0xff] }
  0x2b   : > { %3848 = vmatprep.subr.msk.bf16.mxu1 %vm4533_vm1, %v3846_v32  ;;  %v3864_v6 = vpack.c.bf16 %v545_v0, %v544_v63  ;;  %v496_v7 = vld [vmem:[%s4529_s29 + $0x50] sm:$0xff]  ;;  %v497_v8 = vld [vmem:[%s4529_s29 + $0x58] sm:$0xff]  ;;  %v515_v12 = vld [vmem:[%s4529_s29 + $0xe8] sm:$0xff] }
  0x2c   : > { %v528_v9 = vld [vmem:[%s4529_s29 + $0x150] sm:$0xff]  ;;  %v529_v10 = vld [vmem:[%s4529_s29 + $0x158] sm:$0xff]  ;;  %v546_v13 = vld [vmem:[%s4529_s29 + $0x1e0] sm:$0xff]  ;;  %v3819_v15 = vpack.c.bf16 %v497_v8, %v496_v7  ;;  %v3822_v17 = vpack.c.bf16 %v515_v12, %v514_v11 }
  0x2d   : > { %v547_v14 = vld [vmem:[%s4529_s29 + $0x1e8] sm:$0xff]  ;;  %v3867_v16 = vpack.c.bf16 %v529_v10, %v528_v9  ;;  %v498_v19 = vld [vmem:[%s4529_s29 + $0x60] sm:$0xff]  ;;  %v516_v23 = vld [vmem:[%s4529_s29 + $0xf0] sm:$0xff] }
  0x2e   : > { %v3870_v18 = vpack.c.bf16 %v547_v14, %v546_v13  ;;  %v499_v20 = vld [vmem:[%s4529_s29 + $0x68] sm:$0xff]  ;;  %v530_v21 = vld [vmem:[%s4529_s29 + $0x160] sm:$0xff]  ;;  %v517_v24 = vld [vmem:[%s4529_s29 + $0xf8] sm:$0xff] }
  0x2f   : > { %v531_v22 = vld [vmem:[%s4529_s29 + $0x168] sm:$0xff]  ;;  %v548_v25 = vld [vmem:[%s4529_s29 + $0x1f0] sm:$0xff]  ;;  %v549_v26 = vld [vmem:[%s4529_s29 + $0x1f8] sm:$0xff]  ;;  %v3825_v27 = vpack.c.bf16 %v499_v20, %v498_v19  ;;  %v3828_v29 = vpack.c.bf16 %v517_v24, %v516_v23 }
  0x30   : > { %v3873_v28 = vpack.c.bf16 %v531_v22, %v530_v21  ;;  %v3876_v30 = vpack.c.bf16 %v549_v26, %v548_v25  ;;  %v500_v31 = vld [vmem:[%s4529_s29 + $0x70] sm:$0xff]  ;;  %v501_v32 = vld [vmem:[%s4529_s29 + $0x78] sm:$0xff]  ;;  %v566_v35 = vld [vmem:[%s4529_s29 + $0x280] sm:$0xff] }
  0x31   : > { %3803 = vmatpush3.bf16.xpose.msk.msra.mxu0 %vm4533_vm1, %v3801_v41  ;;  %v532_v33 = vld [vmem:[%s4529_s29 + $0x170] sm:$0xff]  ;;  %v533_v34 = vld [vmem:[%s4529_s29 + $0x178] sm:$0xff]  ;;  %v567_v36 = vld [vmem:[%s4529_s29 + $0x288] sm:$0xff]  ;;  %v3831_v39 = vpack.c.bf16 %v501_v32, %v500_v31 }
  0x32   : > { %3851 = vmatpush3.bf16.xpose.msk.msra.mxu1 %vm4533_vm1, %v3849_v42  ;;  %3806 = vmatprep.subr.msk.bf16.mxu0 %vm4533_vm1, %v3804_v43  ;;  %v598_v37 = vld [vmem:[%s4529_s29 + $0x380] sm:$0xff]  ;;  %v599_v38 = vld [vmem:[%s4529_s29 + $0x388] sm:$0xff]  ;;  %v3879_v40 = vpack.c.bf16 %v533_v34, %v532_v33  ;;  %v3882_v41 = vpack.c.bf16 %v567_v36, %v566_v35  ;;  %v568_v47 = vld [vmem:[%s4529_s29 + $0x290] sm:$0xff] }
  0x33   : > { %3854 = vmatprep.subr.msk.bf16.mxu1 %vm4533_vm1, %v3852_v44  ;;  %v3930_v42 = vpack.c.bf16 %v599_v38, %v598_v37  ;;  %v550_v43 = vld [vmem:[%s4529_s29 + $0x200] sm:$0xff]  ;;  %v551_v44 = vld [vmem:[%s4529_s29 + $0x208] sm:$0xff]  ;;  %v569_v48 = vld [vmem:[%s4529_s29 + $0x298] sm:$0xff] }
  0x34   : > { %v582_v45 = vld [vmem:[%s4529_s29 + $0x300] sm:$0xff]  ;;  %v583_v46 = vld [vmem:[%s4529_s29 + $0x308] sm:$0xff]  ;;  %v600_v49 = vld [vmem:[%s4529_s29 + $0x390] sm:$0xff]  ;;  %v3885_v51 = vpack.c.bf16 %v551_v44, %v550_v43 }
  0x35   : > { %v601_v50 = vld [vmem:[%s4529_s29 + $0x398] sm:$0xff]  ;;  %v3933_v52 = vpack.c.bf16 %v583_v46, %v582_v45  ;;  %v552_v57 = vld [vmem:[%s4529_s29 + $0x210] sm:$0xff]  ;;  %v570_v61 = vld [vmem:[%s4529_s29 + $0x2a0] sm:$0xff] }
  0x36   : > { %v553_v58 = vld [vmem:[%s4529_s29 + $0x218] sm:$0xff]  ;;  %v584_v59 = vld [vmem:[%s4529_s29 + $0x310] sm:$0xff]  ;;  %v571_v62 = vld [vmem:[%s4529_s29 + $0x2a8] sm:$0xff] }
  0x37   : > { %v585_v60 = vld [vmem:[%s4529_s29 + $0x318] sm:$0xff]  ;;  %v602_v63 = vld [vmem:[%s4529_s29 + $0x3a0] sm:$0xff]  ;;  %v603_v0 = vld [vmem:[%s4529_s29 + $0x3a8] sm:$0xff] }
  0x38   : > { %v4728_v7 = vld [vmem:[%s5454_s3 + $0x18] sm:$0xff]  ;;  %v554_v8 = vld [vmem:[%s4529_s29 + $0x220] sm:$0xff]  ;;  %v555_v9 = vld [vmem:[%s4529_s29 + $0x228] sm:$0xff] }
  0x39   : > { %3809 = vmatpush3.bf16.xpose.msk.msra.mxu0 %vm4533_vm1, %v3807_v53  ;;  %v3888_v53 = vpack.c.bf16 %v569_v48, %v568_v47  ;;  %v586_v10 = vld [vmem:[%s4529_s29 + $0x320] sm:$0xff]  ;;  %v587_v11 = vld [vmem:[%s4529_s29 + $0x328] sm:$0xff]  ;;  %v572_v12 = vld [vmem:[%s4529_s29 + $0x2b0] sm:$0xff] }
  0x3a   : > { %3857 = vmatpush3.bf16.xpose.msk.msra.mxu1 %vm4533_vm1, %v3855_v54  ;;  %3812 = vmatprep.subr.msk.bf16.mxu0 %vm4533_vm1, %v3810_v55  ;;  %v3936_v54 = vpack.c.bf16 %v601_v50, %v600_v49  ;;  %v4686_v55 = vld [vmem:[%s5454_s3 + $0x8] sm:$0xff]  ;;  %v573_v13 = vld [vmem:[%s4529_s29 + $0x2b8] sm:$0xff]  ;;  %v604_v14 = vld [vmem:[%s4529_s29 + $0x3b0] sm:$0xff] }
  0x3b   : > { %3860 = vmatprep.subr.msk.bf16.mxu1 %vm4533_vm1, %v3858_v56  ;;  %v4695_v56 = vld [vmem:[%s5454_s3 + $0x10] sm:$0xff]  ;;  %v557_v21 = vld [vmem:[%s4529_s29 + $0x238] sm:$0xff]  ;;  %v574_v24 = vld [vmem:[%s4529_s29 + $0x2c0] sm:$0xff] }
  0x3c   : > { %v556_v20 = vld [vmem:[%s4529_s29 + $0x230] sm:$0xff]  ;;  %v589_v23 = vld [vmem:[%s4529_s29 + $0x338] sm:$0xff]  ;;  %v575_v25 = vld [vmem:[%s4529_s29 + $0x2c8] sm:$0xff] }
  0x3d   : > { %v588_v22 = vld [vmem:[%s4529_s29 + $0x330] sm:$0xff]  ;;  %v606_v26 = vld [vmem:[%s4529_s29 + $0x3c0] sm:$0xff]  ;;  %v559_v33 = vld [vmem:[%s4529_s29 + $0x248] sm:$0xff] }
  0x3e   : > { %v558_v32 = vld [vmem:[%s4529_s29 + $0x240] sm:$0xff]  ;;  %v591_v35 = vld [vmem:[%s4529_s29 + $0x348] sm:$0xff]  ;;  %v576_v36 = vld [vmem:[%s4529_s29 + $0x2d0] sm:$0xff] }
  0x3f   : > { %v590_v34 = vld [vmem:[%s4529_s29 + $0x340] sm:$0xff]  ;;  %v577_v37 = vld [vmem:[%s4529_s29 + $0x2d8] sm:$0xff]  ;;  %v608_v38 = vld [vmem:[%s4529_s29 + $0x3d0] sm:$0xff] }
  0x40   : > { %v560_v44 = vld [vmem:[%s4529_s29 + $0x250] sm:$0xff]  ;;  %v561_v45 = vld [vmem:[%s4529_s29 + $0x258] sm:$0xff]  ;;  %v578_v48 = vld [vmem:[%s4529_s29 + $0x2e0] sm:$0xff] }
  0x41   : > { %3815 = vmatpush3.bf16.xpose.msk.msra.mxu0 %vm4533_vm1, %v3813_v3  ;;  %v3891_v3 = vpack.c.bf16 %v553_v58, %v552_v57  ;;  %v592_v46 = vld [vmem:[%s4529_s29 + $0x350] sm:$0xff]  ;;  %v593_v47 = vld [vmem:[%s4529_s29 + $0x358] sm:$0xff]  ;;  %v579_v49 = vld [vmem:[%s4529_s29 + $0x2e8] sm:$0xff] }
  0x42   : > { %3863 = vmatpush3.bf16.xpose.msk.msra.mxu1 %vm4533_vm1, %v3861_v4  ;;  %3818 = vmatprep.subr.msk.bf16.mxu0 %vm4533_vm1, %v3816_v5  ;;  %v3939_v4 = vpack.c.bf16 %v585_v60, %v584_v59  ;;  %v3894_v5 = vpack.c.bf16 %v571_v62, %v570_v61  ;;  %v610_v50 = vld [vmem:[%s4529_s29 + $0x3e0] sm:$0xff]  ;;  %v563_v59 = vld [vmem:[%s4529_s29 + $0x268] sm:$0xff]  ;;  %v580_v62 = vld [vmem:[%s4529_s29 + $0x2f0] sm:$0xff] }
  0x43   : > { %3866 = vmatprep.subr.msk.bf16.mxu1 %vm4533_vm1, %v3864_v6  ;;  %v3942_v6 = vpack.c.bf16 %v603_v0, %v602_v63  ;;  %v562_v58 = vld [vmem:[%s4529_s29 + $0x260] sm:$0xff]  ;;  %v595_v61 = vld [vmem:[%s4529_s29 + $0x368] sm:$0xff]  ;;  %v581_v63 = vld [vmem:[%s4529_s29 + $0x2f8] sm:$0xff] }
  0x44   : > { %v594_v60 = vld [vmem:[%s4529_s29 + $0x360] sm:$0xff]  ;;  %v612_v0 = vld [vmem:[%s4529_s29 + $0x3f0] sm:$0xff] }
  0x49   : > { %3821 = vmatpush3.bf16.xpose.msk.msra.mxu0 %vm4533_vm1, %v3819_v15  ;;  %v605_v15 = vld [vmem:[%s4529_s29 + $0x3b8] sm:$0xff] }
  0x4a   : > { %3869 = vmatpush3.bf16.xpose.msk.msra.mxu1 %vm4533_vm1, %v3867_v16  ;;  %3824 = vmatprep.subr.msk.bf16.mxu0 %vm4533_vm1, %v3822_v17  ;;  %v3897_v16 = vpack.c.bf16 %v555_v9, %v554_v8  ;;  %v3945_v17 = vpack.c.bf16 %v587_v11, %v586_v10  ;;  %v3948_v19 = vpack.c.bf16 %v605_v15, %v604_v14  ;;  %v564_v9 = vld [vmem:[%s4529_s29 + $0x270] sm:$0xff]  ;;  %v565_v10 = vld [vmem:[%s4529_s29 + $0x278] sm:$0xff]  ;;  %v375_v14 = vld [vmem:[%s4829_s27 + $0x88] sm:$0xff] }
  0x4b   : > { %3872 = vmatprep.subr.msk.bf16.mxu1 %vm4533_vm1, %v3870_v18  ;;  %v3900_v18 = vpack.c.bf16 %v573_v13, %v572_v12  ;;  %v596_v11 = vld [vmem:[%s4529_s29 + $0x370] sm:$0xff]  ;;  %v597_v12 = vld [vmem:[%s4529_s29 + $0x378] sm:$0xff]  ;;  %v374_v13 = vld [vmem:[%s4829_s27 + $0x80] sm:$0xff] }
  0x4c   : > { %v406_v15 = vld [vmem:[%s4829_s27 + $0x180] sm:$0xff] }
  0x51   : > { %3827 = vmatpush3.bf16.xpose.msk.msra.mxu0 %vm4533_vm1, %v3825_v27  ;;  %v607_v27 = vld [vmem:[%s4529_s29 + $0x3c8] sm:$0xff] }
  0x52   : > { %3875 = vmatpush3.bf16.xpose.msk.msra.mxu1 %vm4533_vm1, %v3873_v28  ;;  %3830 = vmatprep.subr.msk.bf16.mxu0 %vm4533_vm1, %v3828_v29  ;;  %v3903_v28 = vpack.c.bf16 %v557_v21, %v556_v20  ;;  %v3951_v29 = vpack.c.bf16 %v589_v23, %v588_v22  ;;  %v3954_v31 = vpack.c.bf16 %v607_v27, %v606_v26  ;;  %v358_v21 = vld [vmem:[%s4829_s27] sm:$0xff]  ;;  %v359_v22 = vld [vmem:[%s4829_s27 + $0x8] sm:$0xff]  ;;  %v377_v26 = vld [vmem:[%s4829_s27 + $0x98] sm:$0xff] }
  0x53   : > { %3878 = vmatprep.subr.msk.bf16.mxu1 %vm4533_vm1, %v3876_v30  ;;  %v3906_v30 = vpack.c.bf16 %v575_v25, %v574_v24  ;;  %v390_v23 = vld [vmem:[%s4829_s27 + $0x100] sm:$0xff]  ;;  %v391_v24 = vld [vmem:[%s4829_s27 + $0x108] sm:$0xff]  ;;  %v376_v25 = vld [vmem:[%s4829_s27 + $0x90] sm:$0xff] }
  0x54   : > { %v408_v27 = vld [vmem:[%s4829_s27 + $0x190] sm:$0xff] }
  0x59   : > { %3833 = vmatpush3.bf16.xpose.msk.msra.mxu0 %vm4533_vm1, %v3831_v39  ;;  %v609_v39 = vld [vmem:[%s4529_s29 + $0x3d8] sm:$0xff] }
  0x5a   : > { %3881 = vmatpush3.bf16.xpose.msk.msra.mxu1 %vm4533_vm1, %v3879_v40  ;;  %3884 = vmatprep.subr.msk.bf16.mxu0 %vm4533_vm1, %v3882_v41  ;;  %v3909_v40 = vpack.c.bf16 %v559_v33, %v558_v32  ;;  %v3957_v41 = vpack.c.bf16 %v591_v35, %v590_v34  ;;  %v3960_v43 = vpack.c.bf16 %v609_v39, %v608_v38  ;;  %v360_v33 = vld [vmem:[%s4829_s27 + $0x10] sm:$0xff]  ;;  %v361_v34 = vld [vmem:[%s4829_s27 + $0x18] sm:$0xff]  ;;  %v379_v38 = vld [vmem:[%s4829_s27 + $0xa8] sm:$0xff] }
  0x5b   : > { %3932 = vmatprep.subr.msk.bf16.mxu1 %vm4533_vm1, %v3930_v42  ;;  %v3912_v42 = vpack.c.bf16 %v577_v37, %v576_v36  ;;  %v392_v35 = vld [vmem:[%s4829_s27 + $0x110] sm:$0xff]  ;;  %v393_v36 = vld [vmem:[%s4829_s27 + $0x118] sm:$0xff]  ;;  %v378_v37 = vld [vmem:[%s4829_s27 + $0xa0] sm:$0xff] }
  0x5c   : > { %v411_v39 = vld [vmem:[%s4829_s27 + $0x1a8] sm:$0xff] }
  0x60   : > { %3499 = vmatmul.mubr.msk.f32.vlgmr.msra.gmra.mrb[0].mxu0 %vm622_vm0, %v4513_v1 }
  0x61   : > { %3539 = vmatmul.mubr.msk.f32.vlgmr.msra.gmra.mrb[0].mxu1 %vm622_vm0, %v4513_v1  ;;  %3887 = vmatpush3.bf16.xpose.msk.msra.mxu0 %vm4533_vm1, %v3885_v51  ;;  %v611_v51 = vld [vmem:[%s4529_s29 + $0x3e8] sm:$0xff] }
  0x62   : > { %3935 = vmatpush3.bf16.xpose.msk.msra.mxu1 %vm4533_vm1, %v3933_v52  ;;  %3890 = vmatprep.subr.msk.bf16.mxu0 %vm4533_vm1, %v3888_v53  ;;  %v3915_v52 = vpack.c.bf16 %v561_v45, %v560_v44  ;;  %v3963_v53 = vpack.c.bf16 %v593_v47, %v592_v46  ;;  %v3966_v57 = vpack.c.bf16 %v611_v51, %v610_v50  ;;  %v363_v44 = vld [vmem:[%s4829_s27 + $0x28] sm:$0xff]  ;;  %v394_v45 = vld [vmem:[%s4829_s27 + $0x120] sm:$0xff]  ;;  %v413_v50 = vld [vmem:[%s4829_s27 + $0x1b8] sm:$0xff] }
  0x63   : > { %3938 = vmatprep.subr.msk.bf16.mxu1 %vm4533_vm1, %v3936_v54  ;;  %3500 = vmatprep.mubr.msk.f32.mxu0 %vm622_vm0, %v4686_v55  ;;  %v3918_v54 = vpack.c.bf16 %v579_v49, %v578_v48  ;;  %v4911_v46 = vld [vmem:[%s5453_s2] sm:$0xff]  ;;  %v395_v47 = vld [vmem:[%s4829_s27 + $0x128] sm:$0xff]  ;;  %v380_v48 = vld [vmem:[%s4829_s27 + $0xb0] sm:$0xff] }
  0x64   : > { %3540 = vmatprep.mubr.msk.f32.mxu1 %vm622_vm0, %v4686_v55  ;;  %3501 = vmatmul.mubr.msk.f32.gmra.mrb[2].mxu0 %vm622_vm0, %v4686_v55  ;;  %v381_v49 = vld [vmem:[%s4829_s27 + $0xb8] sm:$0xff] }
  0x65   : > { %3541 = vmatmul.mubr.msk.f32.gmra.mrb[2].mxu1 %vm622_vm0, %v4686_v55  ;;  %3502 = vmatprep.mubr.msk.f32.mxu0 %vm622_vm0, %v4695_v56 }
  0x66   : > { %3542 = vmatprep.mubr.msk.f32.mxu1 %vm622_vm0, %v4695_v56 }
  0x68   : > { %3503 = vmatmul.mubr.msk.f32.gmra.mrb[4].mxu0 %vm622_vm0, %v4695_v56 }
  0x69   : > { %3893 = vmatpush3.bf16.xpose.msk.msra.mxu0 %vm4533_vm1, %v3891_v3  ;;  %3543 = vmatmul.mubr.msk.f32.gmra.mrb[4].mxu1 %vm622_vm0, %v4695_v56  ;;  %v613_v3 = vld [vmem:[%s4529_s29 + $0x3f8] sm:$0xff]  ;;  %s3050_s29 = scalar_lea.sflag [#allocation4], %s342_s18 }
  0x6a   : > { %3941 = vmatpush3.bf16.xpose.msk.msra.mxu1 %vm4533_vm1, %v3939_v4  ;;  %3896 = vmatprep.subr.msk.bf16.mxu0 %vm4533_vm1, %v3894_v5  ;;  %v3921_v4 = vpack.c.bf16 %v563_v59, %v562_v58  ;;  %v3969_v5 = vpack.c.bf16 %v595_v61, %v594_v60  ;;  %v3972_v8 = vpack.c.bf16 %v613_v3, %v612_v0  ;;  %v2128_v59 = vld [vmem:[%s5455_s4 + $0x8] sm:$0xff]  ;;  %v2130_v60 = vld [vmem:[%s5455_s4 + $0x18] sm:$0xff]  ;;  %v364_v61 = vld [vmem:[%s4829_s27 + $0x30] sm:$0xff] }
  0x6b   : > { %3944 = vmatprep.subr.msk.bf16.mxu1 %vm4533_vm1, %v3942_v6  ;;  %3504 = vmatprep.mubr.msk.f32.mxu0 %vm622_vm0, %v4728_v7  ;;  %v3924_v6 = vpack.c.bf16 %v581_v63, %v580_v62  ;;  %v365_v62 = vld [vmem:[%s4829_s27 + $0x38] sm:$0xff]  ;;  %v396_v63 = vld [vmem:[%s4829_s27 + $0x130] sm:$0xff]  ;;  %v382_v3 = vld [vmem:[%s4829_s27 + $0xc0] sm:$0xff] }
  0x6c   : > { %3544 = vmatprep.mubr.msk.f32.mxu1 %vm622_vm0, %v4728_v7  ;;  %3505 = vmatmul.mubr.msk.f32.gmra.mrb[6].mxu0 %vm622_vm0, %v4728_v7  ;;  %v397_v0 = vld [vmem:[%s4829_s27 + $0x138] sm:$0xff] }
  0x6d   : > { %3545 = vmatmul.mubr.msk.f32.gmra.mrb[6].mxu1 %vm622_vm0, %v4728_v7  ;;  %3578 = vmatprep.mubr.msk.f32.mxu0 %vm622_vm0, %v4513_v1 }
  0x6e   : > { %3618 = vmatprep.mubr.msk.f32.mxu1 %vm622_vm0, %v4513_v1 }
  0x71   : > { %3899 = vmatpush3.bf16.xpose.msk.msra.mxu0 %vm4533_vm1, %v3897_v16  ;;  %v407_v16 = vld [vmem:[%s4829_s27 + $0x188] sm:$0xff] }
  0x72   : > { %3947 = vmatpush3.bf16.xpose.msk.msra.mxu1 %vm4533_vm1, %v3945_v17  ;;  %3902 = vmatprep.subr.msk.bf16.mxu0 %vm4533_vm1, %v3900_v18  ;;  %v3927_v17 = vpack.c.bf16 %v565_v10, %v564_v9  ;;  %v3975_v18 = vpack.c.bf16 %v597_v12, %v596_v11  ;;  %v4026_v20 = vpack.c.bf16 %v407_v16, %v406_v15  ;;  %v2220_v10 = vld [vmem:[%s5457_s6 + $0x8] sm:$0xff]  ;;  %v2222_v15 = vld [vmem:[%s5457_s6 + $0x18] sm:$0xff]  ;;  %v366_v16 = vld [vmem:[%s4829_s27 + $0x40] sm:$0xff] }
  0x73   : > { %3950 = vmatprep.subr.msk.bf16.mxu1 %vm4533_vm1, %v3948_v19  ;;  %v3978_v19 = vpack.c.bf16 %v375_v14, %v374_v13  ;;  %v3999_v9 = vpack.c.bf16 %v365_v62, %v364_v61  ;;  %v4047_v11 = vpack.c.bf16 %v397_v0, %v396_v63  ;;  %v2221_v14 = vld [vmem:[%s5457_s6 + $0x10] sm:$0xff]  ;;  %v422_v0 = vld [vmem:[%s4829_s27 + $0x200] sm:$0xff] }
  0x79   : > { %3905 = vmatpush3.bf16.xpose.msk.msra.mxu0 %vm4533_vm1, %v3903_v28  ;;  %v409_v28 = vld [vmem:[%s4829_s27 + $0x198] sm:$0xff] }
  0x7a   : > { %3953 = vmatpush3.bf16.xpose.msk.msra.mxu1 %vm4533_vm1, %v3951_v29  ;;  %3908 = vmatprep.subr.msk.bf16.mxu0 %vm4533_vm1, %v3906_v30  ;;  %v3981_v29 = vpack.c.bf16 %v359_v22, %v358_v21  ;;  %v4029_v30 = vpack.c.bf16 %v391_v24, %v390_v23  ;;  %v4032_v32 = vpack.c.bf16 %v409_v28, %v408_v27  ;;  %v385_v21 = vld [vmem:[%s4829_s27 + $0xd8] sm:$0xff]  ;;  %v416_v22 = vld [vmem:[%s4829_s27 + $0x1d0] sm:$0xff]  ;;  %v2645_v24 = vld [vmem:[#allocation2] sm:$0x1] }
  0x7b   : > { %3956 = vmatprep.subr.msk.bf16.mxu1 %vm4533_vm1, %v3954_v31  ;;  %v3984_v31 = vpack.c.bf16 %v377_v26, %v376_v25  ;;  %v417_v23 = vld [vmem:[%s4829_s27 + $0x1d8] sm:$0xff] }
  0x7c   : > { %v4056_v28 = vpack.c.bf16 %v417_v23, %v416_v22  ;;  %v443_v22 = vld [vmem:[%s4829_s27 + $0x2a8] sm:$0xff] }
  0x81   : > { %3911 = vmatpush3.bf16.xpose.msk.msra.mxu0 %vm4533_vm1, %v3909_v40  ;;  %v3987_v40 = vpack.c.bf16 %v361_v34, %v360_v33  ;;  %v386_v33 = vld [vmem:[%s4829_s27 + $0xe0] sm:$0xff]  ;;  %v387_v34 = vld [vmem:[%s4829_s27 + $0xe8] sm:$0xff] }
  0x82   : > { %3959 = vmatpush3.bf16.xpose.msk.msra.mxu1 %vm4533_vm1, %v3957_v41  ;;  %3914 = vmatprep.subr.msk.bf16.mxu0 %vm4533_vm1, %v3912_v42  ;;  %v4035_v41 = vpack.c.bf16 %v393_v36, %v392_v35  ;;  %v3990_v42 = vpack.c.bf16 %v379_v38, %v378_v37  ;;  %v418_v35 = vld [vmem:[%s4829_s27 + $0x1e0] sm:$0xff]  ;;  %v419_v36 = vld [vmem:[%s4829_s27 + $0x1e8] sm:$0xff] }
  0x83   : > { %3962 = vmatprep.subr.msk.bf16.mxu1 %vm4533_vm1, %v3960_v43 }
  0x89   : > { %3917 = vmatpush3.bf16.xpose.msk.msra.mxu0 %vm4533_vm1, %v3915_v52  ;;  %v2127_v52 = vld [vmem:[%s5455_s4] sm:$0xff] }
  0x8a   : > { %3965 = vmatpush3.bf16.xpose.msk.msra.mxu1 %vm4533_vm1, %v3963_v53  ;;  %3920 = vmatprep.subr.msk.bf16.mxu0 %vm4533_vm1, %v3918_v54  ;;  %v2129_v53 = vld [vmem:[%s5455_s4 + $0x10] sm:$0xff]  ;;  %v4041_v54 = vpack.c.bf16 %v395_v47, %v394_v45  ;;  %v421_v47 = vld [vmem:[%s4829_s27 + $0x1f8] sm:$0xff] }
  0x8b   : > { %3968 = vmatprep.subr.msk.bf16.mxu1 %vm4533_vm1, %v3966_v57  ;;  %v3996_v57 = vpack.c.bf16 %v381_v49, %v380_v48  ;;  %v420_v45 = vld [vmem:[%s4829_s27 + $0x1f0] sm:$0xff] }
  0x91   : > { %3923 = vmatpush3.bf16.xpose.msk.msra.mxu0 %vm4533_vm1, %v3921_v4  ;;  %v383_v4 = vld [vmem:[%s4829_s27 + $0xc8] sm:$0xff] }
  0x92   : > { %3971 = vmatpush3.bf16.xpose.msk.msra.mxu1 %vm4533_vm1, %v3969_v5  ;;  %3926 = vmatprep.subr.msk.bf16.mxu0 %vm4533_vm1, %v3924_v6  ;;  %v414_v5 = vld [vmem:[%s4829_s27 + $0x1c0] sm:$0xff]  ;;  %v415_v6 = vld [vmem:[%s4829_s27 + $0x1c8] sm:$0xff]  ;;  %v4002_v12 = vpack.c.bf16 %v383_v4, %v382_v3 }
  0x93   : > { %3974 = vmatprep.subr.msk.bf16.mxu1 %vm4533_vm1, %v3972_v8  ;;  %v2219_v8 = vld [vmem:[%s5457_s6] sm:$0xff]  ;;  %v4050_v13 = vpack.c.bf16 %v415_v6, %v414_v5  ;;  %v423_v3 = vld [vmem:[%s4829_s27 + $0x208] sm:$0xff]  ;;  %v440_v6 = vld [vmem:[%s4829_s27 + $0x290] sm:$0xff] }
  0x94   : > { %v454_v4 = vld [vmem:[%s4829_s27 + $0x300] sm:$0xff]  ;;  %v455_v5 = vld [vmem:[%s4829_s27 + $0x308] sm:$0xff] }
  0x99   : > { %3929 = vmatpush3.bf16.xpose.msk.msra.mxu0 %vm4533_vm1, %v3927_v17  ;;  %v367_v17 = vld [vmem:[%s4829_s27 + $0x48] sm:$0xff] }
  0x9a   : > { %3977 = vmatpush3.bf16.xpose.msk.msra.mxu1 %vm4533_vm1, %v3975_v18  ;;  %3980 = vmatprep.subr.msk.bf16.mxu0 %vm4533_vm1, %v3978_v19  ;;  %v398_v18 = vld [vmem:[%s4829_s27 + $0x140] sm:$0xff]  ;;  %v399_v19 = vld [vmem:[%s4829_s27 + $0x148] sm:$0xff]  ;;  %v4005_v25 = vpack.c.bf16 %v367_v17, %v366_v16  ;;  %v5070_v16 = vld [vmem:[%s5453_s2 + $0x10] sm:$0xff] }
  0x9b   : > { %4028 = vmatprep.subr.msk.bf16.mxu1 %vm4533_vm1, %v4026_v20  ;;  %v384_v20 = vld [vmem:[%s4829_s27 + $0xd0] sm:$0xff]  ;;  %v4053_v26 = vpack.c.bf16 %v399_v19, %v398_v18  ;;  %v425_v18 = vld [vmem:[%s4829_s27 + $0x218] sm:$0xff] }
  0x9c   : > { %v4008_v27 = vpack.c.bf16 %v385_v21, %v384_v20  ;;  %v424_v17 = vld [vmem:[%s4829_s27 + $0x210] sm:$0xff]  ;;  %v457_v20 = vld [vmem:[%s4829_s27 + $0x318] sm:$0xff]  ;;  %v442_v21 = vld [vmem:[%s4829_s27 + $0x2a0] sm:$0xff] }
  0x9d   : > { %v456_v19 = vld [vmem:[%s4829_s27 + $0x310] sm:$0xff]  ;;  %v4083_v23 = vpack.c.bf16 %v425_v18, %v424_v17  ;;  %v434_v18 = vld [vmem:[%s4829_s27 + $0x260] sm:$0xff] }
  0xa0   : > { %3579 = vmatmul.mubr.msk.f32.vlgmr.msra.gmra.mrb[8].mxu0 %vm622_vm0, %v4513_v1 }
  0xa1   : > { %3619 = vmatmul.mubr.msk.f32.vlgmr.msra.gmra.mrb[8].mxu1 %vm622_vm0, %v4513_v1  ;;  %3983 = vmatpush3.bf16.xpose.msk.msra.mxu0 %vm4533_vm1, %v3981_v29  ;;  %v410_v1 = vld [vmem:[%s4829_s27 + $0x1a0] sm:$0xff]  ;;  %v368_v29 = vld [vmem:[%s4829_s27 + $0x50] sm:$0xff] }
  0xa2   : > { %4031 = vmatpush3.bf16.xpose.msk.msra.mxu1 %vm4533_vm1, %v4029_v30  ;;  %3986 = vmatprep.subr.msk.bf16.mxu0 %vm4533_vm1, %v3984_v31  ;;  %v4038_v43 = vpack.c.bf16 %v411_v39, %v410_v1  ;;  %v369_v30 = vld [vmem:[%s4829_s27 + $0x58] sm:$0xff]  ;;  %v400_v31 = vld [vmem:[%s4829_s27 + $0x150] sm:$0xff]  ;;  %v4014_v1 = vpack.c.bf16 %v387_v34, %v386_v33  ;;  %v4062_v39 = vpack.c.bf16 %v419_v36, %v418_v35  ;;  %v459_v33 = vld [vmem:[%s4829_s27 + $0x328] sm:$0xff] }
  0xa3   : > { %4034 = vmatprep.subr.msk.bf16.mxu1 %vm4533_vm1, %v4032_v32  ;;  %3580 = vmatprep.mubr.msk.f32.mxu0 %vm622_vm0, %v4686_v55  ;;  %v401_v32 = vld [vmem:[%s4829_s27 + $0x158] sm:$0xff]  ;;  %v4011_v37 = vpack.c.bf16 %v369_v30, %v368_v29  ;;  %v426_v30 = vld [vmem:[%s4829_s27 + $0x220] sm:$0xff]  ;;  %v444_v34 = vld [vmem:[%s4829_s27 + $0x2b0] sm:$0xff] }
  0xa4   : > { %3620 = vmatprep.mubr.msk.f32.mxu1 %vm622_vm0, %v4686_v55  ;;  %3581 = vmatmul.mubr.msk.f32.gmra.mrb[10].mxu0 %vm622_vm0, %v4686_v55  ;;  %v4059_v38 = vpack.c.bf16 %v401_v32, %v400_v31  ;;  %v427_v31 = vld [vmem:[%s4829_s27 + $0x228] sm:$0xff]  ;;  %v458_v32 = vld [vmem:[%s4829_s27 + $0x320] sm:$0xff]  ;;  %v445_v35 = vld [vmem:[%s4829_s27 + $0x2b8] sm:$0xff] }
  0xa5   : > { %3621 = vmatmul.mubr.msk.f32.gmra.mrb[10].mxu1 %vm622_vm0, %v4686_v55  ;;  %3582 = vmatprep.mubr.msk.f32.mxu0 %vm622_vm0, %v4695_v56  ;;  %v362_v55 = vld [vmem:[%s4829_s27 + $0x20] sm:$0xff]  ;;  %v476_v36 = vld [vmem:[%s4829_s27 + $0x3b0] sm:$0xff] }
  0xa6   : > { %3622 = vmatprep.mubr.msk.f32.mxu1 %vm622_vm0, %v4695_v56  ;;  %v3993_v51 = vpack.c.bf16 %v363_v44, %v362_v55  ;;  %v388_v55 = vld [vmem:[%s4829_s27 + $0xf0] sm:$0xff]  ;;  %v389_v44 = vld [vmem:[%s4829_s27 + $0xf8] sm:$0xff] }
  0xa8   : > { %3583 = vmatmul.mubr.msk.f32.gmra.mrb[12].mxu0 %vm622_vm0, %v4695_v56 }
  0xa9   : > { %3989 = vmatpush3.bf16.xpose.msk.msra.mxu0 %vm4533_vm1, %v3987_v40  ;;  %3623 = vmatmul.mubr.msk.f32.gmra.mrb[12].mxu1 %vm622_vm0, %v4695_v56  ;;  %v412_v56 = vld [vmem:[%s4829_s27 + $0x1b0] sm:$0xff]  ;;  %v370_v40 = vld [vmem:[%s4829_s27 + $0x60] sm:$0xff] }
  0xaa   : > { %4037 = vmatpush3.bf16.xpose.msk.msra.mxu1 %vm4533_vm1, %v4035_v41  ;;  %3992 = vmatprep.subr.msk.bf16.mxu0 %vm4533_vm1, %v3990_v42  ;;  %v4044_v58 = vpack.c.bf16 %v413_v50, %v412_v56  ;;  %v371_v41 = vld [vmem:[%s4829_s27 + $0x68] sm:$0xff]  ;;  %v402_v42 = vld [vmem:[%s4829_s27 + $0x160] sm:$0xff]  ;;  %v4020_v56 = vpack.c.bf16 %v389_v44, %v388_v55  ;;  %v4068_v50 = vpack.c.bf16 %v421_v47, %v420_v45  ;;  %v461_v55 = vld [vmem:[%s4829_s27 + $0x338] sm:$0xff] }
  0xab   : > { %4040 = vmatprep.subr.msk.bf16.mxu1 %vm4533_vm1, %v4038_v43  ;;  %3584 = vmatprep.mubr.msk.f32.mxu0 %vm622_vm0, %v4728_v7  ;;  %v403_v43 = vld [vmem:[%s4829_s27 + $0x168] sm:$0xff]  ;;  %v4017_v48 = vpack.c.bf16 %v371_v41, %v370_v40  ;;  %v428_v41 = vld [vmem:[%s4829_s27 + $0x230] sm:$0xff]  ;;  %v446_v44 = vld [vmem:[%s4829_s27 + $0x2c0] sm:$0xff] }
  0xac   : > { %3624 = vmatprep.mubr.msk.f32.mxu1 %vm622_vm0, %v4728_v7  ;;  %3585 = vmatmul.mubr.msk.f32.gmra.mrb[14].mxu0 %vm622_vm0, %v4728_v7  ;;  %v4065_v49 = vpack.c.bf16 %v403_v43, %v402_v42  ;;  %v429_v42 = vld [vmem:[%s4829_s27 + $0x238] sm:$0xff]  ;;  %v460_v43 = vld [vmem:[%s4829_s27 + $0x330] sm:$0xff]  ;;  %v447_v45 = vld [vmem:[%s4829_s27 + $0x2c8] sm:$0xff] }
  0xad   : > { %3625 = vmatmul.mubr.msk.f32.gmra.mrb[14].mxu1 %vm622_vm0, %v4728_v7  ;;  %3658 = vmatprep.mubr.msk.f32.mxu0 %vm622_vm0, %v4911_v46  ;;  %v4406_v7 = vmov 0   ;;  %v478_v47 = vld [vmem:[%s4829_s27 + $0x3c0] sm:$0xff] }
  0xae   : > { %3698 = vmatprep.mubr.msk.f32.mxu1 %vm622_vm0, %v4911_v46  ;;  %4308 = vset.pattern.permute.xlu0 %v4406_v7 }
  0xaf   : > { %2133 = vperm.xlu0 %4308, %v2127_v52   ;;  %4309 = vset.pattern.permute.xlu1 %v4406_v7  ;;  %v373_v52 = vld [vmem:[%s4829_s27 + $0x78] sm:$0xff]  ;;  %v439_v7 = vld [vmem:[%s4829_s27 + $0x288] sm:$0xff] }
  0xb0   : > { %2143 = vperm.xlu1 %4309, %v2129_v53   ;;  %v404_v53 = vld [vmem:[%s4829_s27 + $0x170] sm:$0xff] }
  0xb1   : > { %3995 = vmatpush3.bf16.xpose.msk.msra.mxu0 %vm4533_vm1, %v3993_v51  ;;  %v372_v51 = vld [vmem:[%s4829_s27 + $0x70] sm:$0xff] }
  0xb2   : > { %4043 = vmatpush3.bf16.xpose.msk.msra.mxu1 %vm4533_vm1, %v4041_v54  ;;  %3998 = vmatprep.subr.msk.bf16.mxu0 %vm4533_vm1, %v3996_v57  ;;  %v405_v54 = vld [vmem:[%s4829_s27 + $0x178] sm:$0xff]  ;;  %v438_v57 = vld [vmem:[%s4829_s27 + $0x280] sm:$0xff] }
  0xb3   : > { %4046 = vmatprep.subr.msk.bf16.mxu1 %vm4533_vm1, %v4044_v58  ;;  %2138 = vperm.xlu0 %4308, %v2128_v59   ;;  %v470_v58 = vld [vmem:[%s4829_s27 + $0x380] sm:$0xff]  ;;  %v471_v59 = vld [vmem:[%s4829_s27 + $0x388] sm:$0xff]  ;;  %v4071_v61 = vpack.c.bf16 %v405_v54, %v404_v53  ;;  %v4074_v62 = vpack.c.bf16 %v439_v7, %v438_v57  ;;  %v448_v7 = vld [vmem:[%s4829_s27 + $0x2d0] sm:$0xff] }
  0xb4   : > { %2148 = vperm.xlu1 %4309, %v2130_v60   ;;  %v4023_v60 = vpack.c.bf16 %v373_v52, %v372_v51  ;;  %v4122_v63 = vpack.c.bf16 %v471_v59, %v470_v58  ;;  %v430_v52 = vld [vmem:[%s4829_s27 + $0x240] sm:$0xff]  ;;  %v431_v53 = vld [vmem:[%s4829_s27 + $0x248] sm:$0xff]  ;;  %v449_v58 = vld [vmem:[%s4829_s27 + $0x2d8] sm:$0xff] }
  0xb5   : > { %v462_v54 = vld [vmem:[%s4829_s27 + $0x340] sm:$0xff]  ;;  %v463_v57 = vld [vmem:[%s4829_s27 + $0x348] sm:$0xff]  ;;  %v480_v59 = vld [vmem:[%s4829_s27 + $0x3d0] sm:$0xff] }
  0xb7   : > { %2225 = vperm.xlu0 %4308, %v2219_v8   ;;  %v441_v8 = vld [vmem:[%s4829_s27 + $0x298] sm:$0xff] }
  0xb8   : > { %2230 = vperm.xlu1 %4309, %v2220_v10   ;;  %v472_v10 = vld [vmem:[%s4829_s27 + $0x390] sm:$0xff] }
  0xb9   : > { %4001 = vmatpush3.bf16.xpose.msk.msra.mxu0 %vm4533_vm1, %v3999_v9  ;;  %v4077_v9 = vpack.c.bf16 %v423_v3, %v422_v0  ;;  %v432_v3 = vld [vmem:[%s4829_s27 + $0x250] sm:$0xff] }
  0xba   : > { %4049 = vmatpush3.bf16.xpose.msk.msra.mxu1 %vm4533_vm1, %v4047_v11  ;;  %4004 = vmatprep.subr.msk.bf16.mxu0 %vm4533_vm1, %v4002_v12  ;;  %v473_v11 = vld [vmem:[%s4829_s27 + $0x398] sm:$0xff]  ;;  %v4125_v12 = vpack.c.bf16 %v455_v5, %v454_v4  ;;  %v464_v5 = vld [vmem:[%s4829_s27 + $0x350] sm:$0xff] }
  0xbb   : > { %4052 = vmatprep.subr.msk.bf16.mxu1 %vm4533_vm1, %v4050_v13  ;;  %2235 = vperm.xlu0 %4308, %v2221_v14   ;;  %v5055_v13 = vld [vmem:[%s5453_s2 + $0x8] sm:$0xff]  ;;  %v4080_v14 = vpack.c.bf16 %v441_v8, %v440_v6  ;;  %v433_v4 = vld [vmem:[%s4829_s27 + $0x258] sm:$0xff]  ;;  %v450_v8 = vld [vmem:[%s4829_s27 + $0x2e0] sm:$0xff] }
  0xbc   : > { %2240 = vperm.xlu1 %4309, %v2222_v15   ;;  %v4128_v15 = vpack.c.bf16 %v473_v11, %v472_v10  ;;  %v465_v6 = vld [vmem:[%s4829_s27 + $0x358] sm:$0xff]  ;;  %v482_v10 = vld [vmem:[%s4829_s27 + $0x3e0] sm:$0xff]  ;;  %v483_v11 = vld [vmem:[%s4829_s27 + $0x3e8] sm:$0xff] }
  0xbd   : > { %v4158_v17 = vpack.c.bf16 %v483_v11, %v482_v10 }
  0xbf   : > { %2648 = vperm.xlu0 %4308, %v2645_v24   ;;  %v474_v24 = vld [vmem:[%s4829_s27 + $0x3a0] sm:$0xff] }
  0xc1   : > { %4007 = vmatpush3.bf16.xpose.msk.msra.mxu0 %vm4533_vm1, %v4005_v25  ;;  %v475_v25 = vld [vmem:[%s4829_s27 + $0x3a8] sm:$0xff] }
  0xc2   : > { %4055 = vmatpush3.bf16.xpose.msk.msra.mxu1 %vm4533_vm1, %v4053_v26  ;;  %4010 = vmatprep.subr.msk.bf16.mxu0 %vm4533_vm1, %v4008_v27  ;;  %v4131_v26 = vpack.c.bf16 %v457_v20, %v456_v19  ;;  %v5097_v27 = vld [vmem:[%s5453_s2 + $0x18] sm:$0xff]  ;;  %v4134_v29 = vpack.c.bf16 %v475_v25, %v474_v24  ;;  %v435_v19 = vld [vmem:[%s4829_s27 + $0x268] sm:$0xff]  ;;  %v466_v20 = vld [vmem:[%s4829_s27 + $0x360] sm:$0xff] }
  0xc3   : > { %4058 = vmatprep.subr.msk.bf16.mxu1 %vm4533_vm1, %v4056_v28  ;;  %v4086_v28 = vpack.c.bf16 %v443_v22, %v442_v21  ;;  %v467_v21 = vld [vmem:[%s4829_s27 + $0x368] sm:$0xff]  ;;  %v452_v22 = vld [vmem:[%s4829_s27 + $0x2f0] sm:$0xff]  ;;  %v485_v25 = vld [vmem:[%s4829_s27 + $0x3f8] sm:$0xff] }
  0xc4   : > { %v484_v24 = vld [vmem:[%s4829_s27 + $0x3f0] sm:$0xff] }
  0xc9   : > { %4013 = vmatpush3.bf16.xpose.msk.msra.mxu0 %vm4533_vm1, %v4011_v37  ;;  %v477_v37 = vld [vmem:[%s4829_s27 + $0x3b8] sm:$0xff] }
  0xca   : > { %4061 = vmatpush3.bf16.xpose.msk.msra.mxu1 %vm4533_vm1, %v4059_v38  ;;  %4016 = vmatprep.subr.msk.bf16.mxu0 %vm4533_vm1, %v4014_v1  ;;  %v4089_v38 = vpack.c.bf16 %v427_v31, %v426_v30  ;;  %v4137_v1 = vpack.c.bf16 %v459_v33, %v458_v32  ;;  %v4140_v40 = vpack.c.bf16 %v477_v37, %v476_v36  ;;  %v436_v31 = vld [vmem:[%s4829_s27 + $0x270] sm:$0xff]  ;;  %v437_v32 = vld [vmem:[%s4829_s27 + $0x278] sm:$0xff] }
  0xcb   : > { %4064 = vmatprep.subr.msk.bf16.mxu1 %vm4533_vm1, %v4062_v39  ;;  %v4092_v39 = vpack.c.bf16 %v445_v35, %v444_v34  ;;  %v4164_v30 = vpack.c.bf16 %v485_v25, %v484_v24  ;;  %v468_v33 = vld [vmem:[%s4829_s27 + $0x370] sm:$0xff]  ;;  %v469_v34 = vld [vmem:[%s4829_s27 + $0x378] sm:$0xff]  ;;  %v4119_v35 = vpack.c.bf16 %v437_v32, %v436_v31 }
  0xcc   : > { %v4167_v36 = vpack.c.bf16 %v469_v34, %v468_v33  ;;  %v5268_v34 = vld [vmem:[%s5456_s5] sm:$0xff] }
  0xd1   : > { %4019 = vmatpush3.bf16.xpose.msk.msra.mxu0 %vm4533_vm1, %v4017_v48  ;;  %v479_v48 = vld [vmem:[%s4829_s27 + $0x3c8] sm:$0xff] }
  0xd2   : > { %4067 = vmatpush3.bf16.xpose.msk.msra.mxu1 %vm4533_vm1, %v4065_v49  ;;  %4022 = vmatprep.subr.msk.bf16.mxu0 %vm4533_vm1, %v4020_v56  ;;  %v4095_v49 = vpack.c.bf16 %v429_v42, %v428_v41  ;;  %v4143_v56 = vpack.c.bf16 %v461_v55, %v460_v43  ;;  %v4146_v51 = vpack.c.bf16 %v479_v48, %v478_v47 }
  0xd3   : > { %4070 = vmatprep.subr.msk.bf16.mxu1 %vm4533_vm1, %v4068_v50  ;;  %v4098_v50 = vpack.c.bf16 %v447_v45, %v446_v44 }
  0xd9   : > { %4025 = vmatpush3.bf16.xpose.msk.msra.mxu0 %vm4533_vm1, %v4023_v60  ;;  %v481_v60 = vld [vmem:[%s4829_s27 + $0x3d8] sm:$0xff] }
  0xda   : > { %4073 = vmatpush3.bf16.xpose.msk.msra.mxu1 %vm4533_vm1, %v4071_v61  ;;  %4076 = vmatprep.subr.msk.bf16.mxu0 %vm4533_vm1, %v4074_v62  ;;  %v4101_v61 = vpack.c.bf16 %v431_v53, %v430_v52  ;;  %v4149_v62 = vpack.c.bf16 %v463_v57, %v462_v54  ;;  %v4152_v0 = vpack.c.bf16 %v481_v60, %v480_v59 }
  0xdb   : > { %4124 = vmatprep.subr.msk.bf16.mxu1 %vm4533_vm1, %v4122_v63  ;;  %v4104_v63 = vpack.c.bf16 %v449_v58, %v448_v7 }
  0xe0   : > { %3659 = vmatmul.mubr.msk.f32.vlgmr.msra.gmra.mrb[0].mxu0 %vm622_vm0, %v4911_v46 }
  0xe1   : > { %3699 = vmatmul.mubr.msk.f32.vlgmr.msra.gmra.mrb[0].mxu1 %vm622_vm0, %v4911_v46  ;;  %4079 = vmatpush3.bf16.xpose.msk.msra.mxu0 %vm4533_vm1, %v4077_v9  ;;  %v451_v9 = vld [vmem:[%s4829_s27 + $0x2e8] sm:$0xff] }
  0xe2   : > { %4127 = vmatpush3.bf16.xpose.msk.msra.mxu1 %vm4533_vm1, %v4125_v12  ;;  %3660 = vmatprep.mubr.msk.f32.mxu0 %vm622_vm0, %v5055_v13  ;;  %v4107_v12 = vpack.c.bf16 %v433_v4, %v432_v3 }
  0xe3   : > { %3700 = vmatprep.mubr.msk.f32.mxu1 %vm622_vm0, %v5055_v13  ;;  %4082 = vmatprep.subr.msk.bf16.mxu0 %vm4533_vm1, %v4080_v14  ;;  %v4155_v14 = vpack.c.bf16 %v465_v6, %v464_v5 }
  0xe4   : > { %3661 = vmatmul.mubr.msk.f32.gmra.mrb[2].mxu0 %vm622_vm0, %v5055_v13  ;;  %4130 = vmatprep.subr.msk.bf16.mxu1 %vm4533_vm1, %v4128_v15  ;;  %v4110_v15 = vpack.c.bf16 %v451_v9, %v450_v8 }
  0xe5   : > { %3701 = vmatmul.mubr.msk.f32.gmra.mrb[2].mxu1 %vm622_vm0, %v5055_v13  ;;  %3662 = vmatprep.mubr.msk.f32.mxu0 %vm622_vm0, %v5070_v16 }
  0xe6   : > { %3702 = vmatprep.mubr.msk.f32.mxu1 %vm622_vm0, %v5070_v16 }
  0xe8   : > { %3663 = vmatmul.mubr.msk.f32.gmra.mrb[4].mxu0 %vm622_vm0, %v5070_v16 }
  0xe9   : > { %3703 = vmatmul.mubr.msk.f32.gmra.mrb[4].mxu1 %vm622_vm0, %v5070_v16  ;;  %4085 = vmatpush3.bf16.xpose.msk.msra.mxu0 %vm4533_vm1, %v4083_v23  ;;  %v453_v23 = vld [vmem:[%s4829_s27 + $0x2f8] sm:$0xff]  ;;  %s3064_s27 = sshll.u32 %s344_s24, 4  ;;  %s5411_s27 = int_to_ptr.vmem [resolvable:$true] %s3064_s27 }
  0xea   : > { %4133 = vmatpush3.bf16.xpose.msk.msra.mxu1 %vm4533_vm1, %v4131_v26  ;;  %3664 = vmatprep.mubr.msk.f32.mxu0 %vm622_vm0, %v5097_v27  ;;  %v4113_v26 = vpack.c.bf16 %v435_v19, %v434_v18  ;;  %s4342_s30 = scalar_lea.vmem %s5411_s27, 128  ;;  %p4349_p0 = scmp.lt.s32.totalorder %s5411_s27, %s4347_s8 }
  0xeb   : > { %3704 = vmatprep.mubr.msk.f32.mxu1 %vm622_vm0, %v5097_v27  ;;  %4088 = vmatprep.subr.msk.bf16.mxu0 %vm4533_vm1, %v4086_v28  ;;  %v4161_v28 = vpack.c.bf16 %v467_v21, %v466_v20  ;;  %p4343_p11 = scmp.ne.s32.totalorder %s5411_s27, %s4342_s30  ;;  %p4350_p1 = scmp.lt.s32.totalorder %s4348_s15, %s4342_s30 }
  0xec   : > { %3665 = vmatmul.mubr.msk.f32.gmra.mrb[6].mxu0 %vm622_vm0, %v5097_v27  ;;  %4136 = vmatprep.subr.msk.bf16.mxu1 %vm4533_vm1, %v4134_v29  ;;  %v4116_v29 = vpack.c.bf16 %v453_v23, %v452_v22 }
  0xed   : > { %3705 = vmatmul.mubr.msk.f32.gmra.mrb[6].mxu1 %vm622_vm0, %v5097_v27  ;;  %3738 = vmatprep.mubr.msk.f32.mxu0 %vm622_vm0, %v4911_v46  ;;  %p4344_p12 = pnand %p4343_p11, %p4498_p5  ;;  %p4351_p2 = por %p4350_p1, %p4349_p0 }
  0xee   : > { %3778 = vmatprep.mubr.msk.f32.mxu1 %vm622_vm0, %v4911_v46 }
  0xef   : > { %p4345_p13 = pneg %p4344_p12 }
  0xf1   : > { %4091 = vmatpush3.bf16.xpose.msk.msra.mxu0 %vm4533_vm1, %v4089_v38  ;;  %p4352_p3 = pnand %p4351_p2, %p4345_p13 }
  0xf2   : > { %4139 = vmatpush3.bf16.xpose.msk.msra.mxu1 %vm4533_vm1, %v4137_v1  ;;  %4094 = vmatprep.subr.msk.bf16.mxu0 %vm4533_vm1, %v4092_v39 }
  0xf3   : > { %4142 = vmatprep.subr.msk.bf16.mxu1 %vm4533_vm1, %v4140_v40 }
  0xf9   : > { %4097 = vmatpush3.bf16.xpose.msk.msra.mxu0 %vm4533_vm1, %v4095_v49 }
  0xfa   : > { %4145 = vmatpush3.bf16.xpose.msk.msra.mxu1 %vm4533_vm1, %v4143_v56  ;;  %4100 = vmatprep.subr.msk.bf16.mxu0 %vm4533_vm1, %v4098_v50 }
  0xfb   : > { %4148 = vmatprep.subr.msk.bf16.mxu1 %vm4533_vm1, %v4146_v51 }
 0x101   : > { %4103 = vmatpush3.bf16.xpose.msk.msra.mxu0 %vm4533_vm1, %v4101_v61 }
 0x102   : > { %4151 = vmatpush3.bf16.xpose.msk.msra.mxu1 %vm4533_vm1, %v4149_v62  ;;  %4106 = vmatprep.subr.msk.bf16.mxu0 %vm4533_vm1, %v4104_v63 }
 0x103   : > { %4154 = vmatprep.subr.msk.bf16.mxu1 %vm4533_vm1, %v4152_v0 }
 0x109   : > { %4109 = vmatpush3.bf16.xpose.msk.msra.mxu0 %vm4533_vm1, %v4107_v12 }
 0x10a   : > { %4157 = vmatpush3.bf16.xpose.msk.msra.mxu1 %vm4533_vm1, %v4155_v14  ;;  %4112 = vmatprep.subr.msk.bf16.mxu0 %vm4533_vm1, %v4110_v15 }
 0x10b   : > { %4160 = vmatprep.subr.msk.bf16.mxu1 %vm4533_vm1, %v4158_v17 }
 0x111   : > { %4115 = vmatpush3.bf16.xpose.msk.msra.mxu0 %vm4533_vm1, %v4113_v26 }
 0x112   : > { %4163 = vmatpush3.bf16.xpose.msk.msra.mxu1 %vm4533_vm1, %v4161_v28  ;;  %4118 = vmatprep.subr.msk.bf16.mxu0 %vm4533_vm1, %v4116_v29 }
 0x113   : > { %4166 = vmatprep.subr.msk.bf16.mxu1 %vm4533_vm1, %v4164_v30 }
 0x119   : > { %4121 = vmatpush3.bf16.xpose.msk.msra.mxu0 %vm4533_vm1, %v4119_v35  ;;  %v5278_v35 = vld [vmem:[%s5456_s5 + $0x8] sm:$0xff] }
 0x11a   : > { %4169 = vmatpush3.bf16.xpose.msk.msra.mxu1 %vm4533_vm1, %v4167_v36  ;;  %v5289_v36 = vld [vmem:[%s5456_s5 + $0x10] sm:$0xff] }
 0x120   : > { %3739 = vmatmul.mubr.msk.f32.vlgmr.msra.gmra.mrb[8].mxu0 %vm622_vm0, %v4911_v46 }
 0x121   : > { %3779 = vmatmul.mubr.msk.f32.vlgmr.msra.gmra.mrb[8].mxu1 %vm622_vm0, %v4911_v46  ;;  %3740 = vmatprep.mubr.msk.f32.mxu0 %vm622_vm0, %v5055_v13 }
 0x122   : > { %3780 = vmatprep.mubr.msk.f32.mxu1 %vm622_vm0, %v5055_v13 }
 0x124   : > { %3741 = vmatmul.mubr.msk.f32.gmra.mrb[10].mxu0 %vm622_vm0, %v5055_v13 }
 0x125   : > { %3781 = vmatmul.mubr.msk.f32.gmra.mrb[10].mxu1 %vm622_vm0, %v5055_v13  ;;  %3742 = vmatprep.mubr.msk.f32.mxu0 %vm622_vm0, %v5070_v16 }
 0x126   : > { %3782 = vmatprep.mubr.msk.f32.mxu1 %vm622_vm0, %v5070_v16 }
 0x128   : > { %3743 = vmatmul.mubr.msk.f32.gmra.mrb[12].mxu0 %vm622_vm0, %v5070_v16 }
 0x129   : > { %3783 = vmatmul.mubr.msk.f32.gmra.mrb[12].mxu1 %vm622_vm0, %v5070_v16  ;;  %3744 = vmatprep.mubr.msk.f32.mxu0 %vm622_vm0, %v5097_v27 }
 0x12a   : > { %3784 = vmatprep.mubr.msk.f32.mxu1 %vm622_vm0, %v5097_v27 }
 0x12c   : > { %3745 = vmatmul.mubr.msk.f32.gmra.mrb[14].mxu0 %vm622_vm0, %v5097_v27 }
 0x12d   : > { %3785 = vmatmul.mubr.msk.f32.gmra.mrb[14].mxu1 %vm622_vm0, %v5097_v27  ;;  %2320 = vmatprep.mubr.f32.mxu0 %v4407_v2 }
 0x12e   : > { %2409 = vmatprep.mubr.f32.mxu1 %v4407_v2  ;;  %v5241_v46 = vpop.permute.xlu0 %2133 }
 0x12f   : > { %v5248_v42 = vpop.permute.xlu1 %2143 }
 0x132   : > { %v5243_v1 = vpop.permute.xlu0 %2138 }
 0x133   : > { %v5255_v4 = vpop.permute.xlu1 %2148 }
 0x1b3   : > { %v1837_v13 = vpop.f32.mrb[0].mxu0 }
 0x1b4   : > { %v1926_v16 = vpop.f32.mrb[0].mxu1  ;;  %v1839_v37 = vpop.f32.mrb[1].mxu0  ;;  %v2151_v39 = vadd.f32 %v5241_v46, %v1837_v13  ;;  %v5300_v13 = vld [vmem:[%s5456_s5 + $0x18] sm:$0xff] }
 0x1b5   : > { %v1928_v38 = vpop.f32.mrb[1].mxu1  ;;  %v2153_v40 = vadd.f32 %v5241_v46, %v1926_v16  ;;  %v2152_v41 = vadd.f32 %v5241_v46, %v1839_v37 }
 0x1b6   : > { %v2154_v43 = vadd.f32 %v5241_v46, %v1928_v38  ;;  %v2183_v56 = vmax.f32 %v2151_v39, 0.0 }
 0x1b7   : > { %v1843_v27 = vpop.f32.mrb[2].mxu0  ;;  %v2185_v52 = vmax.f32 %v2153_v40, 0.0  ;;  %v2184_v53 = vmax.f32 %v2152_v41, 0.0 }
 0x1b8   : > { %v2159_v55 = vadd.f32 %v5243_v1, %v1843_v27  ;;  %v1932_v44 = vpop.f32.mrb[2].mxu1  ;;  %v1845_v45 = vpop.f32.mrb[3].mxu0  ;;  %v2186_v58 = vmax.f32 %v2154_v43, 0.0 }
 0x1b9   : > { %v2161_v47 = vadd.f32 %v5243_v1, %v1932_v44  ;;  %v2160_v48 = vadd.f32 %v5243_v1, %v1845_v45  ;;  %v1934_v49 = vpop.f32.mrb[3].mxu1 }
 0x1ba   : > { %v2191_v50 = vmax.f32 %v2159_v55, 0.0  ;;  %v2162_v51 = vadd.f32 %v5243_v1, %v1934_v49 }
 0x1bb   : > { %v2193_v54 = vmax.f32 %v2161_v47, 0.0  ;;  %v2192_v57 = vmax.f32 %v2160_v48, 0.0  ;;  %v1849_v7 = vpop.f32.mrb[4].mxu0 }
 0x1bc   : > { %v4172_v59 = vpack.c.bf16 %v2191_v50, %v2183_v56  ;;  %v2194_v60 = vmax.f32 %v2162_v51, 0.0  ;;  %v1938_v61 = vpop.f32.mrb[4].mxu1  ;;  %v1851_v62 = vpop.f32.mrb[5].mxu0  ;;  %v2167_v6 = vadd.f32 %v5248_v42, %v1849_v7 }
 0x1bd   : > { %v4180_v63 = vpack.c.bf16 %v2193_v54, %v2185_v52  ;;  %v4170_v0 = vpack.c.bf16 %v2192_v57, %v2184_v53  ;;  %v1940_v3 = vpop.f32.mrb[5].mxu1  ;;  %v2169_v8 = vadd.f32 %v5248_v42, %v1938_v61  ;;  %v2168_v9 = vadd.f32 %v5248_v42, %v1851_v62 }
 0x1be   : > { %v4178_v5 = vpack.c.bf16 %v2194_v60, %v2186_v58  ;;  %v2170_v11 = vadd.f32 %v5248_v42, %v1940_v3  ;;  %v2199_v20 = vmax.f32 %v2167_v6, 0.0 }
 0x1bf   : > { %v1855_v10 = vpop.f32.mrb[6].mxu0  ;;  %4171 = vmatprep.subr.bf16.mxu0 %v4170_v0  ;;  %v2201_v23 = vmax.f32 %v2169_v8, 0.0  ;;  %v2200_v24 = vmax.f32 %v2168_v9, 0.0 }
 0x1c0   : > { %v2175_v12 = vadd.f32 %v5255_v4, %v1855_v10  ;;  %v1944_v14 = vpop.f32.mrb[6].mxu1  ;;  %4179 = vmatprep.subr.bf16.mxu1 %v4178_v5  ;;  %v1857_v15 = vpop.f32.mrb[7].mxu0  ;;  %4173 = vmatpush1.bf16.msra.mxu0 %v4172_v59  ;;  %v2202_v28 = vmax.f32 %v2170_v11, 0.0 }
 0x1c1   : > { %v2177_v17 = vadd.f32 %v5255_v4, %v1944_v14  ;;  %v2176_v18 = vadd.f32 %v5255_v4, %v1857_v15  ;;  %v1946_v19 = vpop.f32.mrb[7].mxu1  ;;  %4181 = vmatpush1.bf16.msra.mxu1 %v4180_v63 }
 0x1c2   : > { %v2207_v21 = vmax.f32 %v2175_v12, 0.0  ;;  %v2178_v22 = vadd.f32 %v5255_v4, %v1946_v19 }
 0x1c3   : > { %v2209_v25 = vmax.f32 %v2177_v17, 0.0  ;;  %v2208_v26 = vmax.f32 %v2176_v18, 0.0 }
 0x1c4   : > { %v4176_v29 = vpack.c.bf16 %v2207_v21, %v2199_v20  ;;  %v2210_v30 = vmax.f32 %v2178_v22, 0.0 }
 0x1c5   : > { %v4184_v31 = vpack.c.bf16 %v2209_v25, %v2201_v23  ;;  %v4174_v32 = vpack.c.bf16 %v2208_v26, %v2200_v24 }
 0x1c6   : > { %v4182_v33 = vpack.c.bf16 %v2210_v30, %v2202_v28 }
 0x1c7   : > { %4175 = vmatprep.subr.bf16.mxu0 %v4174_v32 }
 0x1c8   : > { %4183 = vmatprep.subr.bf16.mxu1 %v4182_v33  ;;  %4177 = vmatpush1.bf16.msra.mxu0 %v4176_v29 }
 0x1c9   : > { %4185 = vmatpush1.bf16.msra.mxu1 %v4184_v31 }
 0x1cb   : > { %3432 = vmatmul.mubr.msk.f32.vlgmr.msra.gmra.mrb[16].mxu0 %vm2243_vm2, %v5268_v34 }
 0x1cc   : > { %3436 = vmatmul.mubr.msk.f32.vlgmr.msra.gmra.mrb[16].mxu1 %vm2243_vm2, %v5268_v34  ;;  %2326 = vmatprep.mubr.f32.mxu0 %v4407_v2 }
 0x1cd   : > { %2415 = vmatprep.mubr.f32.mxu1 %v4407_v2 }
 0x1cf   : > { %3433 = vmatmul.mubr.msk.f32.gmra.mrb[18].mxu0 %vm2243_vm2, %v5278_v35 }
 0x1d0   : > { %3437 = vmatmul.mubr.msk.f32.gmra.mrb[18].mxu1 %vm2243_vm2, %v5278_v35  ;;  %2332 = vmatprep.mubr.f32.mxu0 %v4407_v2 }
 0x1d1   : > { %2421 = vmatprep.mubr.f32.mxu1 %v4407_v2 }
 0x1d3   : > { %3434 = vmatmul.mubr.msk.f32.gmra.mrb[20].mxu0 %vm2243_vm2, %v5289_v36 }
 0x1d4   : > { %3438 = vmatmul.mubr.msk.f32.gmra.mrb[20].mxu1 %vm2243_vm2, %v5289_v36  ;;  %2338 = vmatprep.mubr.f32.mxu0 %v4407_v2 }
 0x1d5   : > { %2427 = vmatprep.mubr.f32.mxu1 %v4407_v2 }
 0x1d7   : > { %3435 = vmatmul.mubr.msk.f32.gmra.mrb[22].mxu0 %vm2243_vm2, %v5300_v13 }
 0x1d8   : > { %3439 = vmatmul.mubr.msk.f32.gmra.mrb[22].mxu1 %vm2243_vm2, %v5300_v13  ;;  %2498 = vmatprep.mubr.f32.mxu0 %v4407_v2 }
 0x1d9   : > { %2587 = vmatprep.mubr.f32.mxu1 %v4407_v2 }
 0x1f3   : > { %v2015_v16 = vpop.f32.mrb[8].mxu0 }
 0x1f4   : > { %v2104_v37 = vpop.f32.mrb[8].mxu1  ;;  %v2017_v38 = vpop.f32.mrb[9].mxu0  ;;  %v2155_v40 = vadd.f32 %v5241_v46, %v2015_v16 }
 0x1f5   : > { %v2106_v39 = vpop.f32.mrb[9].mxu1  ;;  %v2157_v41 = vadd.f32 %v5241_v46, %v2104_v37  ;;  %v2156_v27 = vadd.f32 %v5241_v46, %v2017_v38  ;;  %v5352_v16 = vpop.permute.xlu1 %2230 }
 0x1f6   : > { %v2158_v55 = vadd.f32 %v5241_v46, %v2106_v39  ;;  %v2187_v50 = vmax.f32 %v2155_v40, 0.0 }
 0x1f7   : > { %v2021_v43 = vpop.f32.mrb[10].mxu0  ;;  %v2189_v53 = vmax.f32 %v2157_v41, 0.0  ;;  %v2188_v54 = vmax.f32 %v2156_v27, 0.0 }
 0x1f8   : > { %v2163_v44 = vadd.f32 %v5243_v1, %v2021_v43  ;;  %v2110_v45 = vpop.f32.mrb[10].mxu1  ;;  %v2023_v47 = vpop.f32.mrb[11].mxu0  ;;  %v2190_v59 = vmax.f32 %v2158_v55, 0.0 }
 0x1f9   : > { %v2165_v48 = vadd.f32 %v5243_v1, %v2110_v45  ;;  %v2164_v49 = vadd.f32 %v5243_v1, %v2023_v47  ;;  %v2112_v56 = vpop.f32.mrb[11].mxu1 }
 0x1fa   : > { %v2195_v51 = vmax.f32 %v2163_v44, 0.0  ;;  %v2166_v52 = vadd.f32 %v5243_v1, %v2112_v56 }
 0x1fb   : > { %v2197_v57 = vmax.f32 %v2165_v48, 0.0  ;;  %v2196_v7 = vmax.f32 %v2164_v49, 0.0  ;;  %v2027_v58 = vpop.f32.mrb[12].mxu0 }
 0x1fc   : > { %v4188_v46 = vpack.c.bf16 %v2195_v51, %v2187_v50  ;;  %v2198_v60 = vmax.f32 %v2166_v52, 0.0  ;;  %v2116_v61 = vpop.f32.mrb[12].mxu1  ;;  %v2029_v62 = vpop.f32.mrb[13].mxu0  ;;  %v2171_v6 = vadd.f32 %v5248_v42, %v2027_v58 }
 0x1fd   : > { %v4196_v63 = vpack.c.bf16 %v2197_v57, %v2189_v53  ;;  %v4186_v0 = vpack.c.bf16 %v2196_v7, %v2188_v54  ;;  %v2118_v3 = vpop.f32.mrb[13].mxu1  ;;  %v2173_v8 = vadd.f32 %v5248_v42, %v2116_v61  ;;  %v2172_v1 = vadd.f32 %v5248_v42, %v2029_v62 }
 0x1fe   : > { %v4194_v5 = vpack.c.bf16 %v2198_v60, %v2190_v59  ;;  %v2174_v10 = vadd.f32 %v5248_v42, %v2118_v3  ;;  %v2203_v19 = vmax.f32 %v2171_v6, 0.0 }
 0x1ff   : > { %v2033_v9 = vpop.f32.mrb[14].mxu0  ;;  %4187 = vmatprep.subr.bf16.mxu0 %v4186_v0  ;;  %v2205_v22 = vmax.f32 %v2173_v8, 0.0  ;;  %v2204_v23 = vmax.f32 %v2172_v1, 0.0  ;;  %v5364_v0 = vpop.permute.xlu1 %2240 }
 0x200   : > { %v2179_v11 = vadd.f32 %v5255_v4, %v2033_v9  ;;  %v2122_v12 = vpop.f32.mrb[14].mxu1  ;;  %4195 = vmatprep.subr.bf16.mxu1 %v4194_v5  ;;  %v2035_v14 = vpop.f32.mrb[15].mxu0  ;;  %4189 = vmatpush1.bf16.msra.mxu0 %v4188_v46  ;;  %v2206_v25 = vmax.f32 %v2174_v10, 0.0 }
 0x201   : > { %v2181_v15 = vadd.f32 %v5255_v4, %v2122_v12  ;;  %v2180_v17 = vadd.f32 %v5255_v4, %v2035_v14  ;;  %v2124_v18 = vpop.f32.mrb[15].mxu1  ;;  %4197 = vmatpush1.bf16.msra.mxu1 %v4196_v63 }
 0x202   : > { %v2211_v20 = vmax.f32 %v2179_v11, 0.0  ;;  %v2182_v21 = vadd.f32 %v5255_v4, %v2124_v18 }
 0x203   : > { %v2213_v24 = vmax.f32 %v2181_v15, 0.0  ;;  %v2212_v42 = vmax.f32 %v2180_v17, 0.0 }
 0x204   : > { %v4192_v26 = vpack.c.bf16 %v2211_v20, %v2203_v19  ;;  %v2214_v28 = vmax.f32 %v2182_v21, 0.0 }
 0x205   : > { %v4200_v29 = vpack.c.bf16 %v2213_v24, %v2205_v22  ;;  %v4190_v30 = vpack.c.bf16 %v2212_v42, %v2204_v23 }
 0x206   : > { %v4198_v31 = vpack.c.bf16 %v2214_v28, %v2206_v25 }
 0x207   : > { %4191 = vmatprep.subr.bf16.mxu0 %v4190_v30 }
 0x208   : > { %4199 = vmatprep.subr.bf16.mxu1 %v4198_v31  ;;  %4193 = vmatpush1.bf16.msra.mxu0 %v4192_v26 }
 0x209   : > { %4201 = vmatpush1.bf16.msra.mxu1 %v4200_v29  ;;  %v5376_v29 = vld [vmem:[%s5458_s7] sm:$0x1] }
 0x20b   : > { %3440 = vmatmul.mubr.msk.f32.vlgmr.msra.gmra.mrb[24].mxu0 %vm2243_vm2, %v5268_v34 }
 0x20c   : > { %3444 = vmatmul.mubr.msk.f32.vlgmr.msra.gmra.mrb[24].mxu1 %vm2243_vm2, %v5268_v34  ;;  %2504 = vmatprep.mubr.f32.mxu0 %v4407_v2  ;;  %v5349_v34 = vpop.permute.xlu0 %2225 }
 0x20d   : > { %2593 = vmatprep.mubr.f32.mxu1 %v4407_v2 }
 0x20f   : > { %3441 = vmatmul.mubr.msk.f32.gmra.mrb[26].mxu0 %vm2243_vm2, %v5278_v35 }
 0x210   : > { %3445 = vmatmul.mubr.msk.f32.gmra.mrb[26].mxu1 %vm2243_vm2, %v5278_v35  ;;  %2510 = vmatprep.mubr.f32.mxu0 %v4407_v2  ;;  %v5361_v59 = vpop.permute.xlu0 %2235 }
 0x211   : > { %2599 = vmatprep.mubr.f32.mxu1 %v4407_v2 }
 0x213   : > { %3442 = vmatmul.mubr.msk.f32.gmra.mrb[28].mxu0 %vm2243_vm2, %v5289_v36 }
 0x214   : > { %3446 = vmatmul.mubr.msk.f32.gmra.mrb[28].mxu1 %vm2243_vm2, %v5289_v36  ;;  %2516 = vmatprep.mubr.f32.mxu0 %v4407_v2 }
 0x215   : > { %2605 = vmatprep.mubr.f32.mxu1 %v4407_v2 }
 0x217   : > { %3443 = vmatmul.mubr.msk.f32.gmra.mrb[30].mxu0 %vm2243_vm2, %v5300_v13 }
 0x218   : > { %3447 = vmatmul.mubr.msk.f32.gmra.mrb[30].mxu1 %vm2243_vm2, %v5300_v13  ;;  %2722 = vmatprep.mubr.f32.mxu0 %v4407_v2 }
 0x219   : > { %2793 = vmatprep.mubr.f32.mxu1 %v4407_v2 }
 0x29e   : > { %v2322_v4 = vpop.f32.mrb[16].mxu0 }
 0x29f   : > { %v2411_v32 = vpop.f32.mrb[16].mxu1  ;;  %v2324_v33 = vpop.f32.mrb[17].mxu0  ;;  %v2323_v36 = vadd.f32 %v2322_v4, %v5349_v34 }
 0x2a0   : > { %v2413_v35 = vpop.f32.mrb[17].mxu1  ;;  %v2412_v37 = vadd.f32 %v2411_v32, %v5349_v34  ;;  %v2325_v38 = vadd.f32 %v2324_v33, %v5349_v34 }
 0x2a1   : > { %v2414_v13 = vadd.f32 %v2413_v35, %v5349_v34  ;;  %v2612_v45 = vmax.f32 %v2323_v36, 0.0 }
 0x2a2   : > { %v2328_v39 = vpop.f32.mrb[18].mxu0  ;;  %v2614_v49 = vmax.f32 %v2412_v37, 0.0  ;;  %v2613_v56 = vmax.f32 %v2325_v38, 0.0 }
 0x2a3   : > { %v2329_v40 = vadd.f32 %v2328_v39, %v5352_v16  ;;  %v2417_v41 = vpop.f32.mrb[18].mxu1  ;;  %v2330_v27 = vpop.f32.mrb[19].mxu0  ;;  %v2615_v53 = vmax.f32 %v2414_v13, 0.0 }
 0x2a4   : > { %v2418_v43 = vadd.f32 %v2417_v41, %v5352_v16  ;;  %v2331_v55 = vadd.f32 %v2330_v27, %v5352_v16  ;;  %v2419_v44 = vpop.f32.mrb[19].mxu1 }
 0x2a5   : > { %v2620_v47 = vmax.f32 %v2329_v40, 0.0  ;;  %v2420_v48 = vadd.f32 %v2419_v44, %v5352_v16 }
 0x2a6   : > { %v2622_v50 = vmax.f32 %v2418_v43, 0.0  ;;  %v2621_v51 = vmax.f32 %v2331_v55, 0.0  ;;  %v2334_v52 = vpop.f32.mrb[20].mxu0 }
 0x2a7   : > { %v4204_v54 = vpack.c.bf16 %v2620_v47, %v2612_v45  ;;  %v2623_v57 = vmax.f32 %v2420_v48, 0.0  ;;  %v2423_v7 = vpop.f32.mrb[20].mxu1  ;;  %v2336_v58 = vpop.f32.mrb[21].mxu0  ;;  %v2335_v63 = vadd.f32 %v2334_v52, %v5361_v59 }
 0x2a8   : > { %v4212_v46 = vpack.c.bf16 %v2622_v50, %v2614_v49  ;;  %v4202_v60 = vpack.c.bf16 %v2621_v51, %v2613_v56  ;;  %v2425_v61 = vpop.f32.mrb[21].mxu1  ;;  %v2424_v3 = vadd.f32 %v2423_v7, %v5361_v59  ;;  %v2337_v5 = vadd.f32 %v2336_v58, %v5361_v59 }
 0x2a9   : > { %v4210_v62 = vpack.c.bf16 %v2623_v57, %v2615_v53  ;;  %v2426_v8 = vadd.f32 %v2425_v61, %v5361_v59  ;;  %v2628_v15 = vmax.f32 %v2335_v63, 0.0 }
 0x2aa   : > { %v2340_v6 = vpop.f32.mrb[22].mxu0  ;;  %4203 = vmatprep.subr.bf16.mxu0 %v4202_v60  ;;  %v2630_v19 = vmax.f32 %v2424_v3, 0.0  ;;  %v2629_v20 = vmax.f32 %v2337_v5, 0.0 }
 0x2ab   : > { %v2341_v1 = vadd.f32 %v2340_v6, %v5364_v0  ;;  %v2429_v9 = vpop.f32.mrb[22].mxu1  ;;  %4211 = vmatprep.subr.bf16.mxu1 %v4210_v62  ;;  %v2342_v10 = vpop.f32.mrb[23].mxu0  ;;  %4205 = vmatpush1.bf16.msra.mxu0 %v4204_v54  ;;  %v2631_v23 = vmax.f32 %v2426_v8, 0.0 }
 0x2ac   : > { %v2430_v11 = vadd.f32 %v2429_v9, %v5364_v0  ;;  %v2343_v12 = vadd.f32 %v2342_v10, %v5364_v0  ;;  %v2431_v14 = vpop.f32.mrb[23].mxu1  ;;  %4213 = vmatpush1.bf16.msra.mxu1 %v4212_v46 }
 0x2ad   : > { %v2636_v17 = vmax.f32 %v2341_v1, 0.0  ;;  %v2432_v18 = vadd.f32 %v2431_v14, %v5364_v0 }
 0x2ae   : > { %v2638_v21 = vmax.f32 %v2430_v11, 0.0  ;;  %v2637_v22 = vmax.f32 %v2343_v12, 0.0 }
 0x2af   : > { %v4208_v24 = vpack.c.bf16 %v2636_v17, %v2628_v15  ;;  %v2639_v42 = vmax.f32 %v2432_v18, 0.0 }
 0x2b0   : > { %v4216_v25 = vpack.c.bf16 %v2638_v21, %v2630_v19  ;;  %v4206_v26 = vpack.c.bf16 %v2637_v22, %v2629_v20 }
 0x2b1   : > { %v4214_v28 = vpack.c.bf16 %v2639_v42, %v2631_v23  ;;  %v2649_v42 = vpop.permute.xlu0 %2648 }
 0x2b2   : > { %4207 = vmatprep.subr.bf16.mxu0 %v4206_v26 }
 0x2b3   : > { %4215 = vmatprep.subr.bf16.mxu1 %v4214_v28  ;;  %4209 = vmatpush1.bf16.msra.mxu0 %v4208_v24 }
 0x2b4   : > { %4217 = vmatpush1.bf16.msra.mxu1 %v4216_v25 }
 0x2b6   : > { %3448 = vmatmul.mubr.msk.f32.vlgmr.msra.gmra.mrb[32].mxu0 %vm2243_vm2, %v5376_v29 }
 0x2b7   : > { %3449 = vmatmul.mubr.msk.f32.vlgmr.msra.gmra.mrb[32].mxu1 %vm2243_vm2, %v5376_v29  ;;  %2864 = vmatprep.mubr.f32.mxu0 %v4407_v2 }
 0x2b8   : > { %2935 = vmatprep.mubr.f32.mxu1 %v4407_v2 }
 0x2de   : > { %v2500_v30 = vpop.f32.mrb[24].mxu0 }
 0x2df   : > { %v2589_v31 = vpop.f32.mrb[24].mxu1  ;;  %v2502_v4 = vpop.f32.mrb[25].mxu0  ;;  %v2501_v33 = vadd.f32 %v2500_v30, %v5349_v34 }
 0x2e0   : > { %v2591_v32 = vpop.f32.mrb[25].mxu1  ;;  %v2590_v35 = vadd.f32 %v2589_v31, %v5349_v34  ;;  %v2503_v36 = vadd.f32 %v2502_v4, %v5349_v34 }
 0x2e1   : > { %v2592_v38 = vadd.f32 %v2591_v32, %v5349_v34  ;;  %v2616_v43 = vmax.f32 %v2501_v33, 0.0 }
 0x2e2   : > { %v2506_v37 = vpop.f32.mrb[26].mxu0  ;;  %v2618_v45 = vmax.f32 %v2590_v35, 0.0  ;;  %v2617_v47 = vmax.f32 %v2503_v36, 0.0 }
 0x2e3   : > { %v2507_v39 = vadd.f32 %v2506_v37, %v5352_v16  ;;  %v2595_v13 = vpop.f32.mrb[26].mxu1  ;;  %v2508_v40 = vpop.f32.mrb[27].mxu0  ;;  %v2619_v50 = vmax.f32 %v2592_v38, 0.0 }
 0x2e4   : > { %v2596_v41 = vadd.f32 %v2595_v13, %v5352_v16  ;;  %v2509_v2 = vadd.f32 %v2508_v40, %v5352_v16  ;;  %v2597_v27 = vpop.f32.mrb[27].mxu1 }
 0x2e5   : > { %v2624_v55 = vmax.f32 %v2507_v39, 0.0  ;;  %v2598_v44 = vadd.f32 %v2597_v27, %v5352_v16 }
 0x2e6   : > { %v2626_v48 = vmax.f32 %v2596_v41, 0.0  ;;  %v2625_v49 = vmax.f32 %v2509_v2, 0.0  ;;  %v2512_v56 = vpop.f32.mrb[28].mxu0 }
 0x2e7   : > { %v4220_v34 = vpack.c.bf16 %v2624_v55, %v2616_v43  ;;  %v2627_v51 = vmax.f32 %v2598_v44, 0.0  ;;  %v2601_v52 = vpop.f32.mrb[28].mxu1  ;;  %v2514_v53 = vpop.f32.mrb[29].mxu0  ;;  %v2513_v46 = vadd.f32 %v2512_v56, %v5361_v59  ;;  %v4408_v44 = vmov 1966171168  }
 0x2e8   : > { %v4228_v54 = vpack.c.bf16 %v2626_v48, %v2618_v45  ;;  %v4218_v57 = vpack.c.bf16 %v2625_v49, %v2617_v47  ;;  %v2603_v7 = vpop.f32.mrb[29].mxu1  ;;  %v2602_v60 = vadd.f32 %v2601_v52, %v5361_v59  ;;  %v2515_v16 = vadd.f32 %v2514_v53, %v5361_v59 }
 0x2e9   : > { %v4226_v58 = vpack.c.bf16 %v2627_v51, %v2619_v50  ;;  %v2604_v62 = vadd.f32 %v2603_v7, %v5361_v59  ;;  %v2632_v9 = vmax.f32 %v2513_v46, 0.0  ;;  %v3003_v45 = vunpack.c.l.s4 %v4408_v44 }
 0x2ea   : > { %v2518_v61 = vpop.f32.mrb[30].mxu0  ;;  %4219 = vmatprep.subr.bf16.mxu0 %v4218_v57  ;;  %v2634_v12 = vmax.f32 %v2602_v60, 0.0  ;;  %v2633_v14 = vmax.f32 %v2515_v16, 0.0 }
 0x2eb   : > { %v2519_v63 = vadd.f32 %v2518_v61, %v5364_v0  ;;  %v2607_v3 = vpop.f32.mrb[30].mxu1  ;;  %4227 = vmatprep.subr.bf16.mxu1 %v4226_v58  ;;  %v2520_v5 = vpop.f32.mrb[31].mxu0  ;;  %4221 = vmatpush1.bf16.msra.mxu0 %v4220_v34  ;;  %v2635_v17 = vmax.f32 %v2604_v62, 0.0  ;;  %v3004_v47 = vunpack.c.0.s8 %v3003_v45 }
 0x2ec   : > { %v2608_v6 = vadd.f32 %v2607_v3, %v5364_v0  ;;  %v2521_v8 = vadd.f32 %v2520_v5, %v5364_v0  ;;  %v2609_v1 = vpop.f32.mrb[31].mxu1  ;;  %4229 = vmatpush1.bf16.msra.mxu1 %v4228_v54 }
 0x2ed   : > { %v2640_v10 = vmax.f32 %v2519_v63, 0.0  ;;  %v2610_v11 = vadd.f32 %v2609_v1, %v5364_v0  ;;  %v2651_v0 = vlaneseq }
 0x2ee   : > { %v2642_v15 = vmax.f32 %v2608_v6, 0.0  ;;  %v2641_v59 = vmax.f32 %v2521_v8, 0.0 }
 0x2ef   : > { %v4224_v18 = vpack.c.bf16 %v2640_v10, %v2632_v9  ;;  %v2643_v19 = vmax.f32 %v2610_v11, 0.0  ;;  %v2652_v23 = vshrl.u32 %v2651_v0, 7 }
 0x2f0   : > { %v4232_v20 = vpack.c.bf16 %v2642_v15, %v2634_v12  ;;  %v4222_v21 = vpack.c.bf16 %v2641_v59, %v2633_v14 }
 0x2f1   : > { %v4230_v22 = vpack.c.bf16 %v2643_v19, %v2635_v17  ;;  %v2653_v24 = vsub.s32 0, %v2652_v23  ;;  %v3007_v56 = vsub.s32 %v3004_v47, %v2652_v23 }
 0x2f2   : > { %4223 = vmatprep.subr.bf16.mxu0 %v4222_v21 }
 0x2f3   : > { %4231 = vmatprep.subr.bf16.mxu1 %v4230_v22  ;;  %4225 = vmatpush1.bf16.msra.mxu0 %v4224_v18  ;;  %v2654_v25 = vrot.slane %v2649_v42, %v2653_v24 }
 0x2f4   : > { %4233 = vmatpush1.bf16.msra.mxu1 %v4232_v20 }
 0x2f6   : > { %3450 = vmatmul.mubr.msk.f32.vlgmr.msra.gmra.mrb[34].mxu0 %vm2243_vm2, %v5376_v29 }
 0x2f7   : > { %3451 = vmatmul.mubr.msk.f32.vlgmr.msra.gmra.mrb[34].mxu1 %vm2243_vm2, %v5376_v29 }
 0x389   : > { %v2724_v26 = vpop.f32.mrb[32].mxu0 }
 0x38a   : > { %v2725_v28 = vadd.f32 %v2724_v26, %v2654_v25  ;;  %v2795_v30 = vpop.f32.mrb[32].mxu1  ;;  %v2726_v31 = vpop.f32.mrb[33].mxu0 }
 0x38b   : > { %v2796_v4 = vadd.f32 %v2795_v30, %v2654_v25  ;;  %v2727_v32 = vadd.f32 %v2726_v31, %v2654_v25  ;;  %v2797_v33 = vpop.f32.mrb[33].mxu1 }
 0x38c   : > { %v3452_v35 = vmul.f32 -1.442695, %v2725_v28  ;;  %v2798_v36 = vadd.f32 %v2797_v33, %v2654_v25 }
 0x38d   : > { %v3454_v37 = vmul.f32 -1.442695, %v2796_v4  ;;  %v3453_v38 = vmul.f32 -1.442695, %v2727_v32 }
 0x38e   : > { %4310 = vpow2.f32 %v3452_v35  ;;  %v3455_v39 = vmul.f32 -1.442695, %v2798_v36 }
 0x38f   : > { %4312 = vpow2.f32 %v3454_v37 }
 0x390   : > { %4314 = vpow2.f32 %v3453_v38 }
 0x391   : > { %4316 = vpow2.f32 %v3455_v39 }
 0x398   : > { %v4311_v29 = vpop.eup %4310 }
 0x399   : > { %v4313_v13 = vpop.eup %4312  ;;  %v2966_v40 = vadd.f32 1.0, %v4311_v29 }
 0x39a   : > { %v4315_v41 = vpop.eup %4314  ;;  %v2968_v2 = vadd.f32 1.0, %v4313_v13 }
 0x39b   : > { %v4317_v27 = vpop.eup %4316  ;;  %4318 = vrcp.f32 %v2966_v40  ;;  %v2967_v43 = vadd.f32 1.0, %v4315_v41 }
 0x39c   : > { %4320 = vrcp.f32 %v2968_v2  ;;  %v2969_v55 = vadd.f32 1.0, %v4317_v27 }
 0x39d   : > { %4322 = vrcp.f32 %v2967_v43 }
 0x39e   : > { %4324 = vrcp.f32 %v2969_v55 }
 0x3a5   : > { %v4319_v48 = vpop.eup %4318 }
 0x3a6   : > { %v4321_v49 = vpop.eup %4320 }
 0x3a7   : > { %v4323_v50 = vpop.eup %4322 }
 0x3a8   : > { %v4325_v34 = vpop.eup %4324  ;;  %v2998_v51 = vcombine.low %v4319_v48, %v4323_v50 }
 0x3a9   : > { %v2999_v52 = vcombine.low %v4321_v49, %v4325_v34 }
 0x3aa   : > { %v3008_v53 = vrot.slane %v2998_v51, %v3007_v56 }
 0x3ab   : > { %v3015_v54 = vrot.slane %v2999_v52, %v3007_v56 }
 0x3ad   : > { %v3030_v57 = vcombine.low %v3008_v53, %v3015_v54 }
 0x3af   : > { %v3038_v42 = vrot.slane %v3030_v57, %v3007_v56 }
 0x3c9   : > { %v2866_v7 = vpop.f32.mrb[34].mxu0 }
 0x3ca   : > { %v2867_v58 = vadd.f32 %v2866_v7, %v2654_v25  ;;  %v2937_v46 = vpop.f32.mrb[34].mxu1  ;;  %v2868_v60 = vpop.f32.mrb[35].mxu0 }
 0x3cb   : > { %v2938_v16 = vadd.f32 %v2937_v46, %v2654_v25  ;;  %v2869_v61 = vadd.f32 %v2868_v60, %v2654_v25  ;;  %v2939_v62 = vpop.f32.mrb[35].mxu1 }
 0x3cc   : > { %v3456_v63 = vmul.f32 -1.442695, %v2867_v58  ;;  %v2940_v3 = vadd.f32 %v2939_v62, %v2654_v25 }
 0x3cd   : > { %v3458_v5 = vmul.f32 -1.442695, %v2938_v16  ;;  %v3457_v6 = vmul.f32 -1.442695, %v2869_v61 }
 0x3ce   : > { %4326 = vpow2.f32 %v3456_v63  ;;  %v3459_v8 = vmul.f32 -1.442695, %v2940_v3 }
 0x3cf   : > { %4328 = vpow2.f32 %v3458_v5 }
 0x3d0   : > { %4330 = vpow2.f32 %v3457_v6 }
 0x3d1   : > { %4332 = vpow2.f32 %v3459_v8 }
 0x3d8   : > { %v4327_v1 = vpop.eup %4326 }
 0x3d9   : > { %v4329_v9 = vpop.eup %4328  ;;  %v2970_v10 = vadd.f32 1.0, %v4327_v1 }
 0x3da   : > { %v4331_v11 = vpop.eup %4330  ;;  %v2972_v12 = vadd.f32 1.0, %v4329_v9 }
 0x3db   : > { %v4333_v14 = vpop.eup %4332  ;;  %4334 = vrcp.f32 %v2970_v10  ;;  %v2971_v15 = vadd.f32 1.0, %v4331_v11 }
 0x3dc   : > { %4336 = vrcp.f32 %v2972_v12  ;;  %v2973_v59 = vadd.f32 1.0, %v4333_v14 }
 0x3dd   : > { %4338 = vrcp.f32 %v2971_v15 }
 0x3de   : > { %4340 = vrcp.f32 %v2973_v59 }
 0x3e5   : > { %v4335_v17 = vpop.eup %4334 }
 0x3e6   : > { %v4337_v18 = vpop.eup %4336 }
 0x3e7   : > { %v4339_v19 = vpop.eup %4338 }
 0x3e8   : > { %v4341_v20 = vpop.eup %4340  ;;  %v3000_v21 = vcombine.low %v4335_v17, %v4339_v19 }
 0x3e9   : > { %v3001_v22 = vcombine.low %v4337_v18, %v4341_v20 }
 0x3ea   : > { %v3022_v0 = vrot.slane %v3000_v21, %v3007_v56 }
 0x3eb   : > { %v3029_v23 = vrot.slane %v3001_v22, %v3007_v56 }
 0x3ed   : > { %v3031_v24 = vcombine.low %v3022_v0, %v3029_v23 }
 0x3ef   : > { %v3045_v25 = vrot.slane %v3031_v24, %v3007_v56 }
 0x3f1   : > { %v3046_v26 = vcombine.low %v3038_v42, %v3045_v25 }
 0x3f3   : > { %3048 = vst [vmem:[%s344_s24] sm:$0xff] %v3046_v26 }
 0x3f4   : > { %4355 = shalt.err (!%p4352_p3)
}
 0x3f5   : > { %s4356_s22 = scalar_lea.hbm %s5409_s28, 128  ;;  %s4360_s23 = scalar_lea.hbm %s5460_s9, 256 }
 0x3f6   : > { %p4357_p4 = scmp.ne.s32.totalorder %s5409_s28, %s4356_s22  ;;  %p4361_p9 = scmp.lt.u32.totalorder %s5409_s28, %s5460_s9 }
 0x3f7   : > { %p4362_p10 = scmp.lt.u32.totalorder %s4360_s23, %s4356_s22  ;;  %p4364_p12 = scmp.lt.u32.totalorder %s4356_s22, %s5409_s28 }
 0x3f8   : > { %p4358_p7 = pnand %p4357_p4, %p4498_p5 }
 0x3f9   : > { %p4363_p11 = por %p4362_p10, %p4361_p9 }
 0x3fa   : > { %p4359_p8 = pneg %p4358_p7 }
 0x3fb   : > { %p4365_p13 = por %p4364_p12, %p4363_p11 }
 0x3fd   : > { %p4366_p0 = pnand %p4365_p13, %p4359_p8 }
 0x3ff   : > { %4369 = shalt.err (!%p4366_p0)
}
 0x400   : > { %4266 = dma.vmem_to_hbm [thread:$0]  (%p4498_p5), %s5411_s27, 128, %s5409_s28, %s3050_s29  }
 0x401 PF: > { %p4272_p1 = scmp.ge.s32.totalorder %s4404_s14, 2  ;;  %s3076_s26 = sand.u32 1, %s4392_s11  }
 0x402   : > { %s3077_s30 = scalar_lea.sflag [#allocation4], %s3076_s26 }
 0x403   : > { %p4269_p2 = pnand %p4272_p1, %p4502_p6 }
 0x405   : > { %4387 = dma.done.wait (!%p4269_p2), %s3077_s30, 128  }
 0x406   : > { %4389 = vsyncadd (!%p4269_p2), %s3077_s30, 4294967168  ;;  %p21_p3 = scmp.ge.s32.totalorder %s4486_s16, 4   ;;  %s5465_s11 = smov %s4396_s12 }
 0x407   : > { %s5466_s12 = smov %s4400_s13  ;;  %s5467_s13 = smov %s4496_s19 }
 0x408   : > { %s5468_s14 = smov %s4486_s16  ;;  %23 = sbr.rel (!%p21_p3) target bundleno = 6 (0x6), region = 94 }
 0x40f   :  { %3082 = vsyncpa [#allocation4], 1 }
 0x410   :  { %3084 = vsyncpa [#allocation4 + $0x1], 1 }

</bundles_post_ra>
